<compile_context>
chip_gen: v6e
topology: v6e:2x2x1
jax: 0.10.0
libtpu: 0.0.40
codegen_flags: <defaults>
</compile_context>

<pallas_src>
import functools
from typing import Optional

import jax
import jax.numpy as jnp
from jax.experimental import pallas as pl
from jax.experimental.pallas import tpu as pltpu


# ----------------------------------------------------------------------------
# Config helpers (mirror the PyTorch module)
# ----------------------------------------------------------------------------
def _make_divisible(v: float, divisor: int = 8, min_value: Optional[int] = None) -> int:
    if min_value is None:
        min_value = divisor
    rounds = int(v + divisor / 2) // divisor * divisor
    new_v = max(min_value, rounds)
    if new_v < 0.9 * v:
        new_v += divisor
    return new_v


class InvertedResidualConfig:
    def __init__(self, input_channels, kernel, expanded_channels, out_channels,
                 use_se, activation, stride, dilation, width_mult):
        self.input_channels = _make_divisible(input_channels * width_mult, 8)
        self.kernel = kernel
        self.expanded_channels = _make_divisible(expanded_channels * width_mult, 8)
        self.out_channels = _make_divisible(out_channels * width_mult, 8)
        self.use_se = use_se
        self.use_hs = activation == "HS"
        self.stride = stride
        self.dilation = dilation


# ----------------------------------------------------------------------------
# Small helpers
# ----------------------------------------------------------------------------
def _apply_act(y, act):
    if act == "hs":          # nn.Hardswish
        return y * (jnp.clip(y + 3.0, 0.0, 6.0) * (1.0 / 6.0))
    if act == "relu":        # nn.ReLU
        return jnp.maximum(y, 0.0)
    return y                 # activation_layer=None


def _physical_vmem_bytes():
    try:
        info = pltpu.get_tpu_info()
        return int(getattr(info, "vmem_capacity_bytes", 64 * 1024 * 1024))
    except Exception:
        return 64 * 1024 * 1024   # conservative default (v7x per-TC VMEM)


def _vmem_cap_bytes():
    # Leave ~25% headroom for compiler-internal scratch / semaphores / double
    # buffers: ~48 MiB on v7x (64 MiB physical), capped at 100 MiB on
    # v5e/v6e (128 MiB physical).
    return int(min(3 * _physical_vmem_bytes() // 4, 100 * 1024 * 1024))


def _vmem_limit_bytes(step_bytes):
    return int(min(_vmem_cap_bytes(), max(32 * 1024 * 1024, int(step_bytes))))


def _pick_m_tile(hw, cin, cout, in_isz, res_isz, out_isz):
    # Fixed large row tile (cdiv grid, partial last block masked by Pallas);
    # shrink only if the double-buffered footprint would not fit the budget.
    budget = min(24 * 1024 * 1024, _physical_vmem_bytes() // 5)
    tm = 1024
    for cand in (1024, 512, 256, 128, 64):
        tm = cand
        foot = 2 * cand * (cin * in_isz + cout * out_isz + cout * res_isz)
        if foot <= budget:
            break
    if hw <= tm:
        tm = hw              # full extent is always a legal block shape
    return tm


# ----------------------------------------------------------------------------
# Shared in-kernel building blocks
# ----------------------------------------------------------------------------
def _fill_padded(xp_ref, interior_f32, pad, h, w, c):
    """Build the zero-padded tile in VMEM, zero-filling ONLY the halo border."""
    Hp, Wp = h + 2 * pad, w + 2 * pad
    if pad > 0:
        zrow = jnp.zeros((pad, Wp, c), jnp.float32)
        xp_ref[0:pad] = zrow
        xp_ref[Hp - pad:Hp] = zrow
        zcol = jnp.zeros((Hp, pad, c), jnp.float32)
        xp_ref[:, 0:pad] = zcol
        xp_ref[:, Wp - pad:Wp] = zcol
    xp_ref[pad:pad + h, pad:pad + w, :] = interior_f32


def _dw_rows(xp_ref, w_ref, s_ref, b_ref, out_ref, *, K, stride, dilation, act,
             h_out, w_out, c, want_pool, store_dtype):
    """Depthwise KxK + folded BN + act, one output row at a time.

    All K*K taps of a row are accumulated in registers and the activated row
    is stored ONCE (no per-tap VMEM accumulator traffic).  Returns the (1, c)
    sum over all output positions (SE squeeze), accumulated as a loop carry.
    """
    def row_body(h_o, pooled):
        row0 = h_o * stride
        acc = None
        for kh in range(K):
            r = row0 + kh * dilation
            for kw in range(K):
                c0 = kw * dilation
                if stride == 1:
                    xs = xp_ref[pl.ds(r, 1), pl.ds(c0, w_out), :]
                else:
                    xs = xp_ref[pl.ds(r, 1), pl.ds(c0, w_out, stride), :]
                t = xs * w_ref[kh:kh + 1, kw:kw + 1, :]
                acc = t if acc is None else acc + t
        y = _apply_act(acc * s_ref[...] + b_ref[...], act)       # (1, w_out, c) f32
        out_ref[pl.ds(h_o, 1)] = y.astype(store_dtype)
        if want_pool:
            pooled = pooled + jnp.sum(y, axis=1)                 # (1, c)
        return pooled

    return jax.lax.fori_loop(0, h_out, row_body,
                             jnp.zeros((1, c), jnp.float32))


# ----------------------------------------------------------------------------
# Kernel 1 (fast path): whole InvertedResidual block fused, one image per step
# ----------------------------------------------------------------------------
def _fused_block_kernel(*refs, K, stride, dilation, pad, act, has_expand,
                        use_se, use_res, h, w, h_out, w_out, cin, cexp, cout):
    it = iter(refs)
    x_ref = next(it)
    if has_expand:
        ew_ref, es_ref, eb_ref = next(it), next(it), next(it)
    dw_ref, ds_ref, db_ref = next(it), next(it), next(it)
    if use_se:
        sw1_ref, sb1_ref, sw2_ref, sb2_ref = next(it), next(it), next(it), next(it)
    pw_ref, ps_ref, pb_ref = next(it), next(it), next(it)
    o_ref = next(it)
    xp_ref = next(it)
    act_ref = next(it)

    # --- 1x1 expand + BN + act, written straight into the padded VMEM tile ---
    if has_expand:
        xflat = x_ref[0].reshape(h * w, cin).astype(jnp.bfloat16)
        e = jnp.dot(xflat, ew_ref[...], preferred_element_type=jnp.float32)
        e = _apply_act(e * es_ref[...] + eb_ref[...], act)
        _fill_padded(xp_ref, e.reshape(h, w, cexp), pad, h, w, cexp)
    else:
        _fill_padded(xp_ref, x_ref[0].astype(jnp.float32), pad, h, w, cexp)

    # --- depthwise KxK + BN + act, SE squeeze fused into the row loop ---
    pooled = _dw_rows(xp_ref, dw_ref, ds_ref, db_ref, act_ref,
                      K=K, stride=stride, dilation=dilation, act=act,
                      h_out=h_out, w_out=w_out, c=cexp, want_pool=use_se,
                      store_dtype=jnp.bfloat16)

    a = act_ref[...].reshape(h_out * w_out, cexp)                # bf16, in VMEM

    # --- SE: two tiny FCs + hardsigmoid; gate applied to the VMEM-resident
    #     activations (the expanded tensor never round-trips HBM) ---
    if use_se:
        p = pooled * (1.0 / float(h_out * w_out))                # (1, cexp)
        hid = jnp.dot(p, sw1_ref[...], preferred_element_type=jnp.float32)
        hid = jnp.maximum(hid + sb1_ref[...], 0.0)
        g = jnp.dot(hid, sw2_ref[...], preferred_element_type=jnp.float32)
        g = jnp.clip(g + sb2_ref[...] + 3.0, 0.0, 6.0) * (1.0 / 6.0)
        a = a * g.astype(jnp.bfloat16)

    # --- 1x1 project + BN (+ residual), single MXU matmul per image ---
    y = jnp.dot(a, pw_ref[...], preferred_element_type=jnp.float32)
    y = y * ps_ref[...] + pb_ref[...]
    if use_res:
        y = y + x_ref[0].reshape(h * w, cin).astype(jnp.float32)
    o_ref[0] = y.reshape(h_out, w_out, cout).astype(o_ref.dtype)


def _fused_footprint_bytes(h, w, cin, cexp, cout, pad, h_out, w_out, K,
                           in_isz, out_isz, use_se):
    Hp, Wp = h + 2 * pad, w + 2 * pad
    x_blk = h * w * cin * in_isz
    o_blk = h_out * w_out * cout * out_isz
    xp = Hp * Wp * cexp * 4
    actb = h_out * w_out * cexp * 2
    tmp = h * w * cexp * 4 + h * w * cin * 2 + h_out * w_out * (cout * 4 + cexp * 2)
    weights = (cin * cexp + cexp * cout) * 2 + K * K * cexp * 4 + 8 * cexp * 4
    if use_se:
        weights += 2 * cexp * cexp * 4
    return 2 * (x_blk + o_blk) + xp + actb + tmp + 2 * weights + (2 << 20)


def _fused_block_call(x_nhwc, params, cnf, *, act, use_res, stride, pad,
                      h_out, w_out, out_dtype, vmem_limit):
    n, h, w, cin = x_nhwc.shape
    cexp, cout, K = cnf.expanded_channels, cnf.out_channels, cnf.kernel
    has_expand = cin != cexp
    use_se = cnf.use_se

    in_specs = [pl.BlockSpec((1, h, w, cin), lambda b: (b, 0, 0, 0))]
    args = [x_nhwc]
    if has_expand:
        in_specs += [pl.BlockSpec((cin, cexp), lambda b: (0, 0)),
                     pl.BlockSpec((1, cexp), lambda b: (0, 0)),
                     pl.BlockSpec((1, cexp), lambda b: (0, 0))]
        args += [params["exp_w"].astype(jnp.bfloat16),
                 params["exp_scale"].reshape(1, cexp).astype(jnp.float32),
                 params["exp_bias"].reshape(1, cexp).astype(jnp.float32)]
    in_specs += [pl.BlockSpec((K, K, cexp), lambda b: (0, 0, 0)),
                 pl.BlockSpec((1, cexp), lambda b: (0, 0)),
                 pl.BlockSpec((1, cexp), lambda b: (0, 0))]
    args += [params["dw_w"].astype(jnp.float32),
             params["dw_scale"].reshape(1, cexp).astype(jnp.float32),
             params["dw_bias"].reshape(1, cexp).astype(jnp.float32)]
    if use_se:
        csq = params["se_w1"].shape[1]
        in_specs += [pl.BlockSpec((cexp, csq), lambda b: (0, 0)),
                     pl.BlockSpec((1, csq), lambda b: (0, 0)),
                     pl.BlockSpec((csq, cexp), lambda b: (0, 0)),
                     pl.BlockSpec((1, cexp), lambda b: (0, 0))]
        args += [params["se_w1"].astype(jnp.float32),
                 params["se_b1"].reshape(1, csq).astype(jnp.float32),
                 params["se_w2"].astype(jnp.float32),
                 params["se_b2"].reshape(1, cexp).astype(jnp.float32)]
    in_specs += [pl.BlockSpec((cexp, cout), lambda b: (0, 0)),
                 pl.BlockSpec((1, cout), lambda b: (0, 0)),
                 pl.BlockSpec((1, cout), lambda b: (0, 0))]
    args += [params["proj_w"].astype(jnp.bfloat16),
             params["proj_scale"].reshape(1, cout).astype(jnp.float32),
             params["proj_bias"].reshape(1, cout).astype(jnp.float32)]

    kernel = functools.partial(
        _fused_block_kernel, K=K, stride=stride, dilation=cnf.dilation, pad=pad,
        act=act, has_expand=has_expand, use_se=use_se, use_res=use_res,
        h=h, w=w, h_out=h_out, w_out=w_out, cin=cin, cexp=cexp, cout=cout)

    return pl.pallas_call(
        kernel,
        out_shape=jax.ShapeDtypeStruct((n, h_out, w_out, cout), out_dtype),
        grid=(n,),
        in_specs=in_specs,
        out_specs=pl.BlockSpec((1, h_out, w_out, cout), lambda b: (b, 0, 0, 0)),
        scratch_shapes=[
            pltpu.VMEM((h + 2 * pad, w + 2 * pad, cexp), jnp.float32),  # padded tile
            pltpu.VMEM((h_out, w_out, cexp), jnp.bfloat16),             # dw activations
        ],
        compiler_params=pltpu.CompilerParams(
            dimension_semantics=("parallel",),
            vmem_limit_bytes=vmem_limit),
    )(*args)


# ----------------------------------------------------------------------------
# Kernel 2 (fallback): 1x1 pointwise conv == per-batch matmul over channels,
# folded BN + optional act + optional SE gate (folded into the weight once per
# batch) + optional fused residual add.
# ----------------------------------------------------------------------------
def _pw_kernel(x_ref, w_ref, s_ref, b_ref, *rest, act, has_gate, has_residual):
    i = 0
    gate_ref = res_ref = wscr_ref = None
    if has_gate:
        gate_ref = rest[i]; i += 1
    if has_residual:
        res_ref = rest[i]; i += 1
    o_ref = rest[i]; i += 1
    if has_gate:
        wscr_ref = rest[i]; i += 1

        @pl.when(pl.program_id(1) == 0)
        def _():
            # Fold the per-(batch, channel) SE gate into the weight once per
            # batch instead of rescaling every (tm, cexp) activation tile.
            wscr_ref[...] = (w_ref[...].astype(jnp.float32)
                             * gate_ref[0]).astype(jnp.bfloat16)
        wmat = wscr_ref[...]
    else:
        wmat = w_ref[...]

    y = jnp.dot(x_ref[0].astype(jnp.bfloat16), wmat,
                preferred_element_type=jnp.float32)              # (tm, cout)
    y = y * s_ref[...] + b_ref[...]                              # folded BN (f32)
    y = _apply_act(y, act)
    if has_residual:
        y = y + res_ref[0].astype(jnp.float32)
    o_ref[0] = y.astype(o_ref.dtype)


def pointwise_conv_bn_act(x3d, w, scale, bias, *, act=None, gate_col=None,
                          residual=None, out_dtype=None):
    # x3d: (n, h*w, cin) NHWC-flattened activations. gate_col: (n, cin, 1) or None.
    n, hw, cin = x3d.shape
    cout = w.shape[1]
    if out_dtype is None:
        out_dtype = x3d.dtype
    res_isz = residual.dtype.itemsize if residual is not None else 0
    tm = _pick_m_tile(hw, cin, cout, x3d.dtype.itemsize, res_isz,
                      jnp.dtype(out_dtype).itemsize)
    grid = (n, pl.cdiv(hw, tm))

    in_specs = [
        pl.BlockSpec((1, tm, cin), lambda b, m: (b, m, 0)),
        pl.BlockSpec((cin, cout), lambda b, m: (0, 0)),
        pl.BlockSpec((1, cout), lambda b, m: (0, 0)),
        pl.BlockSpec((1, cout), lambda b, m: (0, 0)),
    ]
    args = [x3d, w.astype(jnp.bfloat16),
            scale.reshape(1, cout).astype(jnp.float32),
            bias.reshape(1, cout).astype(jnp.float32)]
    scratch_shapes = []
    if gate_col is not None:
        in_specs.append(pl.BlockSpec((1, cin, 1), lambda b, m: (b, 0, 0)))
        args.append(gate_col.astype(jnp.float32))
        scratch_shapes.append(pltpu.VMEM((cin, cout), jnp.bfloat16))
    if residual is not None:
        in_specs.append(pl.BlockSpec((1, tm, cout), lambda b, m: (b, m, 0)))
        args.append(residual)

    step_bytes = (2 * tm * (cin * x3d.dtype.itemsize
                            + cout * jnp.dtype(out_dtype).itemsize
                            + cout * res_isz)
                  + 3 * cin * cout * 2 + cin * 4 + 4 * cout * 4)
    kernel = functools.partial(_pw_kernel, act=act,
                               has_gate=gate_col is not None,
                               has_residual=residual is not None)
    return pl.pallas_call(
        kernel,
        out_shape=jax.ShapeDtypeStruct((n, hw, cout), out_dtype),
        grid=grid,
        in_specs=in_specs,
        out_specs=pl.BlockSpec((1, tm, cout), lambda b, m: (b, m, 0)),
        scratch_shapes=scratch_shapes,
        compiler_params=pltpu.CompilerParams(
            dimension_semantics=("parallel", "arbitrary"),
            vmem_limit_bytes=_vmem_limit_bytes(step_bytes)),
    )(*args)


# ----------------------------------------------------------------------------
# Kernel 3 (fallback): depthwise KxK conv + folded BN + act, halo built in a
# VMEM scratch, SE global-average-pool fused into the row loop.
# ----------------------------------------------------------------------------
def _dw_kernel(x_ref, w_ref, s_ref, b_ref, *rest, K, stride, dilation, pad, act,
               with_pool, h, w, h_out, w_out, c):
    if with_pool:
        o_ref, pool_ref, xp_ref = rest
    else:
        o_ref, xp_ref = rest
        pool_ref = None

    _fill_padded(xp_ref, x_ref[0].astype(jnp.float32), pad, h, w, c)
    pooled = _dw_rows(xp_ref, w_ref, s_ref, b_ref, o_ref,
                      K=K, stride=stride, dilation=dilation, act=act,
                      h_out=h_out, w_out=w_out, c=c, want_pool=with_pool,
                      store_dtype=o_ref.dtype)
    if with_pool:
        pool_ref[0] = pooled * (1.0 / float(h_out * w_out))


def depthwise_conv_bn_act(x_nhwc, w_kkc, scale, bias, *, K, stride, dilation,
                          act, with_pool, out_dtype=jnp.bfloat16):
    # TODO(synk): add output-row-strip tiling with a halo DMA for images whose
    # whole-image footprint exceeds VMEM (only extreme, non-MobileNetV3 shapes).
    n, h, w, c = x_nhwc.shape
    pad = (K - 1) // 2 * dilation
    h_out = (h + 2 * pad - dilation * (K - 1) - 1) // stride + 1
    w_out = (w + 2 * pad - dilation * (K - 1) - 1) // stride + 1
    Hp, Wp = h + 2 * pad, w + 2 * pad

    kernel = functools.partial(_dw_kernel, K=K, stride=stride, dilation=dilation,
                               pad=pad, act=act, with_pool=with_pool,
                               h=h, w=w, h_out=h_out, w_out=w_out, c=c)

    out_shape = [jax.ShapeDtypeStruct((n, h_out, w_out, c), out_dtype)]
    out_specs = [pl.BlockSpec((None, h_out, w_out, c), lambda b: (b, 0, 0, 0))]
    if with_pool:
        out_shape.append(jax.ShapeDtypeStruct((n, 1, c), jnp.float32))
        out_specs.append(pl.BlockSpec((1, 1, c), lambda b: (b, 0, 0)))

    step_bytes = (Hp * Wp * c * 4
                  + 2 * (h * w * c * x_nhwc.dtype.itemsize
                         + h_out * w_out * c * jnp.dtype(out_dtype).itemsize
                         + c * 4)
                  + K * K * c * 4 + 2 * c * 4)

    result = pl.pallas_call(
        kernel,
        out_shape=tuple(out_shape),
        grid=(n,),
        in_specs=[
            pl.BlockSpec((1, h, w, c), lambda b: (b, 0, 0, 0)),
            pl.BlockSpec((K, K, c), lambda b: (0, 0, 0)),
            pl.BlockSpec((1, c), lambda b: (0, 0)),
            pl.BlockSpec((1, c), lambda b: (0, 0)),
        ],
        out_specs=tuple(out_specs),
        scratch_shapes=[pltpu.VMEM((Hp, Wp, c), jnp.float32)],
        compiler_params=pltpu.CompilerParams(
            dimension_semantics=("parallel",),
            vmem_limit_bytes=_vmem_limit_bytes(step_bytes)),
    )(x_nhwc, w_kkc.astype(jnp.float32),
      scale.reshape(1, c).astype(jnp.float32),
      bias.reshape(1, c).astype(jnp.float32))
    if with_pool:
        return result[0], result[1]
    return result[0]


# ----------------------------------------------------------------------------
# Parameter construction (deterministic, eval-mode BatchNorm folded to
# scale/bias).  1x1 conv weights stored as bf16 for the MXU path.
# ----------------------------------------------------------------------------
def _fold_bn(key, c, eps=1e-5):
    k1, k2, k3, k4 = jax.random.split(key, 4)
    gamma = jax.random.uniform(k1, (c,), jnp.float32, 0.5, 1.5)
    beta = 0.1 * jax.random.normal(k2, (c,), jnp.float32)
    mean = 0.1 * jax.random.normal(k3, (c,), jnp.float32)
    var = jax.random.uniform(k4, (c,), jnp.float32, 0.5, 1.5)
    scale = gamma / jnp.sqrt(var + eps)
    bias = beta - mean * scale
    return scale, bias


def make_params(key, cnf: InvertedResidualConfig):
    cin, cexp, cout, K = (cnf.input_channels, cnf.expanded_channels,
                          cnf.out_channels, cnf.kernel)
    csq = _make_divisible(cnf.input_channels * 4, 8)   # per the reference code
    keys = jax.random.split(key, 10)
    p = {}
    if cin != cexp:
        p["exp_w"] = (0.1 * jax.random.normal(keys[0], (cin, cexp), jnp.float32)
                      ).astype(jnp.bfloat16)
        p["exp_scale"], p["exp_bias"] = _fold_bn(keys[1], cexp)
    p["dw_w"] = 0.1 * jax.random.normal(keys[2], (K, K, cexp), jnp.float32)
    p["dw_scale"], p["dw_bias"] = _fold_bn(keys[3], cexp)
    if cnf.use_se:
        p["se_w1"] = 0.1 * jax.random.normal(keys[4], (cexp, csq), jnp.float32)
        p["se_b1"] = 0.01 * jax.random.normal(keys[5], (csq,), jnp.float32)
        p["se_w2"] = 0.1 * jax.random.normal(keys[6], (csq, cexp), jnp.float32)
        p["se_b2"] = 0.01 * jax.random.normal(keys[7], (cexp,), jnp.float32)
    p["proj_w"] = (0.1 * jax.random.normal(keys[8], (cexp, cout), jnp.float32)
                   ).astype(jnp.bfloat16)
    p["proj_scale"], p["proj_bias"] = _fold_bn(keys[9], cout)
    return p


# ----------------------------------------------------------------------------
# Full InvertedResidual forward (native NHWC hot path)
# ----------------------------------------------------------------------------
def inverted_residual_forward_nhwc(x_nhwc, params, cnf: InvertedResidualConfig,
                                   *, force_unfused=False):
    assert 1 <= cnf.stride <= 2
    use_res = cnf.stride == 1 and cnf.input_channels == cnf.out_channels
    act = "hs" if cnf.use_hs else "relu"

    n, h, w, cin = x_nhwc.shape
    cexp, cout, K = cnf.expanded_channels, cnf.out_channels, cnf.kernel
    stride = 1 if cnf.dilation > 1 else cnf.stride
    pad = (K - 1) // 2 * cnf.dilation
    h_out = (h + 2 * pad - cnf.dilation * (K - 1) - 1) // stride + 1
    w_out = (w + 2 * pad - cnf.dilation * (K - 1) - 1) // stride + 1
    out_dtype = x_nhwc.dtype

    cap = _vmem_cap_bytes()
    foot = _fused_footprint_bytes(h, w, cin, cexp, cout, pad, h_out, w_out, K,
                                  x_nhwc.dtype.itemsize,
                                  jnp.dtype(out_dtype).itemsize, cnf.use_se)
    if not force_unfused and foot <= int(0.9 * cap):
        # Fast path: the whole block in one kernel per image; the expanded
        # (H, W, cexp) tensor never touches HBM.
        return _fused_block_call(x_nhwc, params, cnf, act=act, use_res=use_res,
                                 stride=stride, pad=pad, h_out=h_out,
                                 w_out=w_out, out_dtype=out_dtype,
                                 vmem_limit=_vmem_limit_bytes(foot))

    # Fallback: separate kernels (images too large for the fused per-image tile).
    hx = x_nhwc
    if cin != cexp:                                   # 1x1 expand + BN + act
        hx = pointwise_conv_bn_act(
            x_nhwc.reshape(n, h * w, cin), params["exp_w"], params["exp_scale"],
            params["exp_bias"], act=act, out_dtype=jnp.bfloat16,
        ).reshape(n, h, w, cexp)

    dw = depthwise_conv_bn_act(hx, params["dw_w"], params["dw_scale"],
                               params["dw_bias"], K=K, stride=stride,
                               dilation=cnf.dilation, act=act,
                               with_pool=cnf.use_se, out_dtype=jnp.bfloat16)
    if cnf.use_se:
        hxd, pooled = dw
        # SE FCs are tiny (n x cexp): plain JAX, no dedicated grid=(1,) kernel.
        p = pooled.reshape(n, cexp)
        hid = jnp.maximum(p @ params["se_w1"] + params["se_b1"], 0.0)
        g = jnp.clip(hid @ params["se_w2"] + params["se_b2"] + 3.0, 0.0, 6.0) / 6.0
        gate_col = g.reshape(n, cexp, 1)
    else:
        hxd, gate_col = dw, None

    res = x_nhwc.reshape(n, h * w, cin) if use_res else None
    y = pointwise_conv_bn_act(
        hxd.reshape(n, h_out * w_out, cexp), params["proj_w"],
        params["proj_scale"], params["proj_bias"], act=None,
        gate_col=gate_col, residual=res, out_dtype=out_dtype)
    return y.reshape(n, h_out, w_out, cout)


def inverted_residual_forward(x_nchw, params, cnf: InvertedResidualConfig):
    # Thin NCHW adapter for parity with the PyTorch module; the optimized path
    # is NHWC end-to-end.
    x = jnp.transpose(x_nchw, (0, 2, 3, 1))
    y = inverted_residual_forward_nhwc(x, params, cnf)
    return jnp.transpose(y, (0, 3, 1, 2))


# ----------------------------------------------------------------------------
# Pure-JAX reference (same folded BN / weights) for validation
# ----------------------------------------------------------------------------
def _reference_forward(x, params, cnf):
    hp = jax.lax.Precision.HIGHEST
    n, h, w, cin = x.shape
    cexp, cout, K = cnf.expanded_channels, cnf.out_channels, cnf.kernel
    use_res = cnf.stride == 1 and cnf.input_channels == cnf.out_channels
    stride = 1 if cnf.dilation > 1 else cnf.stride
    pad = (K - 1) // 2 * cnf.dilation
    act = ((lambda v: v * jnp.clip(v + 3.0, 0.0, 6.0) / 6.0) if cnf.use_hs
           else (lambda v: jnp.maximum(v, 0.0)))

    hx = x
    if cin != cexp:
        y = jnp.einsum("nhwc,cd->nhwd", x, params["exp_w"].astype(jnp.float32),
                       precision=hp)
        hx = act(y * params["exp_scale"] + params["exp_bias"])
    y = jax.lax.conv_general_dilated(
        hx, params["dw_w"].reshape(K, K, 1, cexp),
        window_strides=(stride, stride), padding=[(pad, pad), (pad, pad)],
        rhs_dilation=(cnf.dilation, cnf.dilation),
        dimension_numbers=("NHWC", "HWIO", "NHWC"),
        feature_group_count=cexp, precision=hp)
    hx = act(y * params["dw_scale"] + params["dw_bias"])
    if cnf.use_se:
        p = jnp.mean(hx, axis=(1, 2))
        hid = jnp.maximum(p @ params["se_w1"] + params["se_b1"], 0.0)
        g = jnp.clip(hid @ params["se_w2"] + params["se_b2"] + 3.0, 0.0, 6.0) / 6.0
        hx = hx * g[:, None, None, :]
    y = jnp.einsum("nhwc,cd->nhwd", hx, params["proj_w"].astype(jnp.float32),
                   precision=hp)
    y = y * params["proj_scale"] + params["proj_bias"]
    if use_res:
        y = y + x
    return y


# ----------------------------------------------------------------------------
# Demo
# ----------------------------------------------------------------------------
if __name__ == "__main__":
    key = jax.random.PRNGKey(0)
    kx, kp = jax.random.split(key)

    # Config 1: expand + SE + Hardswish + stride 1 (residual connection).
    cnf1 = InvertedResidualConfig(
        input_channels=16, kernel=3, expanded_channels=64, out_channels=16,
        use_se=True, activation="HS", stride=1, dilation=1, width_mult=1.0)
    x = jax.random.normal(kx, (2, 16, 16, cnf1.input_channels), jnp.float32)
    params1 = make_params(kp, cnf1)
    ref1 = _reference_forward(x, params1, cnf1)

    fused1 = jax.jit(functools.partial(inverted_residual_forward_nhwc, cnf=cnf1))
    out1 = jax.block_until_ready(fused1(x, params1))
    assert out1.shape == (2, 16, 16, cnf1.out_channels)
    assert bool(jnp.allclose(out1, ref1, atol=5e-2, rtol=5e-2))

    # Same config through the unfused fallback (separate pw / dw kernels).
    unfused1 = jax.jit(functools.partial(inverted_residual_forward_nhwc,
                                         cnf=cnf1, force_unfused=True))
    out1b = jax.block_until_ready(unfused1(x, params1))
    assert bool(jnp.allclose(out1b, ref1, atol=5e-2, rtol=5e-2))

    # Config 2: no SE, ReLU, stride 2 (no residual) to exercise those branches.
    cnf2 = InvertedResidualConfig(
        input_channels=16, kernel=3, expanded_channels=64, out_channels=24,
        use_se=False, activation="RE", stride=2, dilation=1, width_mult=1.0)
    params2 = make_params(jax.random.fold_in(kp, 1), cnf2)
    ref2 = _reference_forward(x, params2, cnf2)
    fused2 = jax.jit(functools.partial(inverted_residual_forward_nhwc, cnf=cnf2))
    out2 = jax.block_until_ready(fused2(x, params2))
    assert out2.shape == (2, 8, 8, cnf2.out_channels)
    assert bool(jnp.allclose(out2, ref2, atol=5e-2, rtol=5e-2))

    print("KERNEL_OK")
</pallas_src>

<mosaic_0001>
module attributes {stable_mosaic.version = 11 : i64} {
  func.func @_fused_block_kernel(%arg0: i32, %arg1: memref<1x16x16x16xf32, #tpu.memory_space<vmem>>, %arg2: memref<16x64xbf16, #tpu.memory_space<vmem>>, %arg3: memref<1x64xf32, #tpu.memory_space<vmem>>, %arg4: memref<1x64xf32, #tpu.memory_space<vmem>>, %arg5: memref<3x3x64xf32, #tpu.memory_space<vmem>>, %arg6: memref<1x64xf32, #tpu.memory_space<vmem>>, %arg7: memref<1x64xf32, #tpu.memory_space<vmem>>, %arg8: memref<64x64xf32, #tpu.memory_space<vmem>>, %arg9: memref<1x64xf32, #tpu.memory_space<vmem>>, %arg10: memref<64x64xf32, #tpu.memory_space<vmem>>, %arg11: memref<1x64xf32, #tpu.memory_space<vmem>>, %arg12: memref<64x16xbf16, #tpu.memory_space<vmem>>, %arg13: memref<1x16xf32, #tpu.memory_space<vmem>>, %arg14: memref<1x16xf32, #tpu.memory_space<vmem>>, %arg15: memref<1x16x16x16xf32, #tpu.memory_space<vmem>>, %arg16: memref<18x18x64xf32, #tpu.memory_space<vmem>>, %arg17: memref<16x16x64xbf16, #tpu.memory_space<vmem>>) attributes {dimension_semantics = [#tpu.dimension_semantics<parallel>], iteration_bounds = array<i64: 2>, scalar_prefetch = 0 : i64, scratch_operands = 2 : i64, tpu.core_type = #tpu.core_type<tc>, window_params = [{transform_indices = @transform_0, window_bounds = array<i64: 1, 16, 16, 16>}, {pipeline_mode = #tpu.pipeline_mode<synchronous>, transform_indices = @transform_1, window_bounds = array<i64: 16, 64>}, {pipeline_mode = #tpu.pipeline_mode<synchronous>, transform_indices = @transform_2, window_bounds = array<i64: 1, 64>}, {pipeline_mode = #tpu.pipeline_mode<synchronous>, transform_indices = @transform_3, window_bounds = array<i64: 1, 64>}, {pipeline_mode = #tpu.pipeline_mode<synchronous>, transform_indices = @transform_4, window_bounds = array<i64: 3, 3, 64>}, {pipeline_mode = #tpu.pipeline_mode<synchronous>, transform_indices = @transform_5, window_bounds = array<i64: 1, 64>}, {pipeline_mode = #tpu.pipeline_mode<synchronous>, transform_indices = @transform_6, window_bounds = array<i64: 1, 64>}, {pipeline_mode = #tpu.pipeline_mode<synchronous>, transform_indices = @transform_7, window_bounds = array<i64: 64, 64>}, {pipeline_mode = #tpu.pipeline_mode<synchronous>, transform_indices = @transform_8, window_bounds = array<i64: 1, 64>}, {pipeline_mode = #tpu.pipeline_mode<synchronous>, transform_indices = @transform_9, window_bounds = array<i64: 64, 64>}, {pipeline_mode = #tpu.pipeline_mode<synchronous>, transform_indices = @transform_10, window_bounds = array<i64: 1, 64>}, {pipeline_mode = #tpu.pipeline_mode<synchronous>, transform_indices = @transform_11, window_bounds = array<i64: 64, 16>}, {pipeline_mode = #tpu.pipeline_mode<synchronous>, transform_indices = @transform_12, window_bounds = array<i64: 1, 16>}, {pipeline_mode = #tpu.pipeline_mode<synchronous>, transform_indices = @transform_13, window_bounds = array<i64: 1, 16>}, {transform_indices = @transform_14, window_bounds = array<i64: 1, 16, 16, 16>}]} {
    %c0 = arith.constant 0 : index
    %c0_0 = arith.constant 0 : index
    %c0_1 = arith.constant 0 : index
    %c0_2 = arith.constant 0 : index
    %0 = vector.load %arg1[%c0, %c0_0, %c0_1, %c0_2] : memref<1x16x16x16xf32, #tpu.memory_space<vmem>>, vector<1x16x16x16xf32>
    %1 = vector.shape_cast %0 : vector<1x16x16x16xf32> to vector<16x16x16xf32>
    %2 = vector.shape_cast %1 : vector<16x16x16xf32> to vector<256x16xf32>
    %3 = arith.truncf %2 : vector<256x16xf32> to vector<256x16xbf16>
    %c0_3 = arith.constant 0 : index
    %c0_4 = arith.constant 0 : index
    %4 = vector.load %arg2[%c0_3, %c0_4] : memref<16x64xbf16, #tpu.memory_space<vmem>>, vector<16x64xbf16>
    %cst = arith.constant dense<0.000000e+00> : vector<256x64xf32>
    %5 = tpu.matmul %3, %4, %cst {dimension_numbers = #tpu.dot_dimension_numbers<[1], [0], [0], [1], [0, 0, 1, 1], [], []>} : vector<256x16xbf16>, vector<16x64xbf16>, vector<256x64xf32> -> vector<256x64xf32>
    %c0_5 = arith.constant 0 : index
    %c0_6 = arith.constant 0 : index
    %6 = vector.load %arg3[%c0_5, %c0_6] : memref<1x64xf32, #tpu.memory_space<vmem>>, vector<1x64xf32>
    %7 = vector.broadcast %6 : vector<1x64xf32> to vector<256x64xf32>
    %8 = arith.mulf %5, %7 : vector<256x64xf32>
    %c0_7 = arith.constant 0 : index
    %c0_8 = arith.constant 0 : index
    %9 = vector.load %arg4[%c0_7, %c0_8] : memref<1x64xf32, #tpu.memory_space<vmem>>, vector<1x64xf32>
    %10 = vector.broadcast %9 : vector<1x64xf32> to vector<256x64xf32>
    %11 = arith.addf %8, %10 : vector<256x64xf32>
    %cst_9 = arith.constant 3.000000e+00 : f32
    %12 = vector.broadcast %cst_9 : f32 to vector<256x64xf32>
    %13 = arith.addf %11, %12 : vector<256x64xf32>
    %cst_10 = arith.constant 0.000000e+00 : f32
    %cst_11 = arith.constant 6.000000e+00 : f32
    %14 = vector.broadcast %cst_10 : f32 to vector<256x64xf32>
    %15 = arith.maximumf %14, %13 : vector<256x64xf32>
    %16 = vector.broadcast %cst_11 : f32 to vector<256x64xf32>
    %17 = arith.minimumf %16, %15 : vector<256x64xf32>
    %cst_12 = arith.constant 0.166666672 : f32
    %18 = vector.broadcast %cst_12 : f32 to vector<256x64xf32>
    %19 = arith.mulf %17, %18 : vector<256x64xf32>
    %20 = arith.mulf %11, %19 : vector<256x64xf32>
    %21 = vector.shape_cast %20 : vector<256x64xf32> to vector<16x16x64xf32>
    %cst_13 = arith.constant 0.000000e+00 : f32
    %22 = vector.broadcast %cst_13 : f32 to vector<1x18x64xf32>
    %c0_14 = arith.constant 0 : index
    %c0_15 = arith.constant 0 : index
    %c0_16 = arith.constant 0 : index
    %23 = vector.load %arg16[%c0_14, %c0_15, %c0_16] : memref<18x18x64xf32, #tpu.memory_space<vmem>>, vector<1x18x64xf32>
    tpu.vector_store %arg16[%c0_14, %c0_15, %c0_16], %22 {strides = array<i32>} : memref<18x18x64xf32, #tpu.memory_space<vmem>>, vector<1x18x64xf32>,
    %c17 = arith.constant 17 : index
    %c0_17 = arith.constant 0 : index
    %c0_18 = arith.constant 0 : index
    %24 = vector.load %arg16[%c17, %c0_17, %c0_18] : memref<18x18x64xf32, #tpu.memory_space<vmem>>, vector<1x18x64xf32>
    tpu.vector_store %arg16[%c17, %c0_17, %c0_18], %22 {strides = array<i32>} : memref<18x18x64xf32, #tpu.memory_space<vmem>>, vector<1x18x64xf32>,
    %cst_19 = arith.constant 0.000000e+00 : f32
    %25 = vector.broadcast %cst_19 : f32 to vector<18x1x64xf32>
    %c0_20 = arith.constant 0 : index
    %c0_21 = arith.constant 0 : index
    %c0_22 = arith.constant 0 : index
    %26 = vector.load %arg16[%c0_20, %c0_21, %c0_22] : memref<18x18x64xf32, #tpu.memory_space<vmem>>, vector<18x1x64xf32>
    tpu.vector_store %arg16[%c0_20, %c0_21, %c0_22], %25 {strides = array<i32>} : memref<18x18x64xf32, #tpu.memory_space<vmem>>, vector<18x1x64xf32>,
    %c0_23 = arith.constant 0 : index
    %c17_24 = arith.constant 17 : index
    %c0_25 = arith.constant 0 : index
    %27 = vector.load %arg16[%c0_23, %c17_24, %c0_25] : memref<18x18x64xf32, #tpu.memory_space<vmem>>, vector<18x1x64xf32>
    tpu.vector_store %arg16[%c0_23, %c17_24, %c0_25], %25 {strides = array<i32>} : memref<18x18x64xf32, #tpu.memory_space<vmem>>, vector<18x1x64xf32>,
    %c1 = arith.constant 1 : index
    %c1_26 = arith.constant 1 : index
    %c0_27 = arith.constant 0 : index
    %28 = vector.load %arg16[%c1, %c1_26, %c0_27] : memref<18x18x64xf32, #tpu.memory_space<vmem>>, vector<16x16x64xf32>
    tpu.vector_store %arg16[%c1, %c1_26, %c0_27], %21 {strides = array<i32>} : memref<18x18x64xf32, #tpu.memory_space<vmem>>, vector<16x16x64xf32>,
    %cst_28 = arith.constant 0.000000e+00 : f32
    %29 = vector.broadcast %cst_28 : f32 to vector<1x64xf32>
    %c0_i32 = arith.constant 0 : i32
    %c16_i32 = arith.constant 16 : i32
    %30 = arith.addi %c0_i32, %c16_i32 : i32
    %c1_i32 = arith.constant 1 : i32
    %31 = scf.for %arg18 = %c0_i32 to %30 step %c1_i32 iter_args(%arg19 = %29) -> (vector<1x64xf32>)  : i32 {
      %c1_i32_64 = arith.constant 1 : i32
      %73 = arith.muli %arg18, %c1_i32_64 : i32
      %c0_i32_65 = arith.constant 0 : i32
      %74 = arith.addi %73, %c0_i32_65 : i32
      %75 = arith.index_cast %74 : i32 to index
      %c0_66 = arith.constant 0 : index
      %c0_67 = arith.constant 0 : index
      %76 = vector.load %arg16[%75, %c0_66, %c0_67] : memref<18x18x64xf32, #tpu.memory_space<vmem>>, vector<1x16x64xf32>
      %c0_68 = arith.constant 0 : index
      %c0_69 = arith.constant 0 : index
      %c0_70 = arith.constant 0 : index
      %77 = vector.load %arg5[%c0_68, %c0_69, %c0_70] : memref<3x3x64xf32, #tpu.memory_space<vmem>>, vector<1x1x64xf32>
      %78 = vector.broadcast %77 : vector<1x1x64xf32> to vector<1x16x64xf32>
      %79 = arith.mulf %76, %78 : vector<1x16x64xf32>
      %80 = arith.index_cast %74 : i32 to index
      %c1_71 = arith.constant 1 : index
      %c0_72 = arith.constant 0 : index
      %81 = vector.load %arg16[%80, %c1_71, %c0_72] : memref<18x18x64xf32, #tpu.memory_space<vmem>>, vector<1x16x64xf32>
      %c0_73 = arith.constant 0 : index
      %c1_74 = arith.constant 1 : index
      %c0_75 = arith.constant 0 : index
      %82 = vector.load %arg5[%c0_73, %c1_74, %c0_75] : memref<3x3x64xf32, #tpu.memory_space<vmem>>, vector<1x1x64xf32>
      %83 = vector.broadcast %82 : vector<1x1x64xf32> to vector<1x16x64xf32>
      %84 = arith.mulf %81, %83 : vector<1x16x64xf32>
      %85 = arith.addf %79, %84 : vector<1x16x64xf32>
      %86 = arith.index_cast %74 : i32 to index
      %c2 = arith.constant 2 : index
      %c0_76 = arith.constant 0 : index
      %87 = vector.load %arg16[%86, %c2, %c0_76] : memref<18x18x64xf32, #tpu.memory_space<vmem>>, vector<1x16x64xf32>
      %c0_77 = arith.constant 0 : index
      %c2_78 = arith.constant 2 : index
      %c0_79 = arith.constant 0 : index
      %88 = vector.load %arg5[%c0_77, %c2_78, %c0_79] : memref<3x3x64xf32, #tpu.memory_space<vmem>>, vector<1x1x64xf32>
      %89 = vector.broadcast %88 : vector<1x1x64xf32> to vector<1x16x64xf32>
      %90 = arith.mulf %87, %89 : vector<1x16x64xf32>
      %91 = arith.addf %85, %90 : vector<1x16x64xf32>
      %c1_i32_80 = arith.constant 1 : i32
      %92 = arith.addi %73, %c1_i32_80 : i32
      %93 = arith.index_cast %92 : i32 to index
      %c0_81 = arith.constant 0 : index
      %c0_82 = arith.constant 0 : index
      %94 = vector.load %arg16[%93, %c0_81, %c0_82] : memref<18x18x64xf32, #tpu.memory_space<vmem>>, vector<1x16x64xf32>
      %c1_83 = arith.constant 1 : index
      %c0_84 = arith.constant 0 : index
      %c0_85 = arith.constant 0 : index
      %95 = vector.load %arg5[%c1_83, %c0_84, %c0_85] : memref<3x3x64xf32, #tpu.memory_space<vmem>>, vector<1x1x64xf32>
      %96 = vector.broadcast %95 : vector<1x1x64xf32> to vector<1x16x64xf32>
      %97 = arith.mulf %94, %96 : vector<1x16x64xf32>
      %98 = arith.addf %91, %97 : vector<1x16x64xf32>
      %99 = arith.index_cast %92 : i32 to index
      %c1_86 = arith.constant 1 : index
      %c0_87 = arith.constant 0 : index
      %100 = vector.load %arg16[%99, %c1_86, %c0_87] : memref<18x18x64xf32, #tpu.memory_space<vmem>>, vector<1x16x64xf32>
      %c1_88 = arith.constant 1 : index
      %c1_89 = arith.constant 1 : index
      %c0_90 = arith.constant 0 : index
      %101 = vector.load %arg5[%c1_88, %c1_89, %c0_90] : memref<3x3x64xf32, #tpu.memory_space<vmem>>, vector<1x1x64xf32>
      %102 = vector.broadcast %101 : vector<1x1x64xf32> to vector<1x16x64xf32>
      %103 = arith.mulf %100, %102 : vector<1x16x64xf32>
      %104 = arith.addf %98, %103 : vector<1x16x64xf32>
      %105 = arith.index_cast %92 : i32 to index
      %c2_91 = arith.constant 2 : index
      %c0_92 = arith.constant 0 : index
      %106 = vector.load %arg16[%105, %c2_91, %c0_92] : memref<18x18x64xf32, #tpu.memory_space<vmem>>, vector<1x16x64xf32>
      %c1_93 = arith.constant 1 : index
      %c2_94 = arith.constant 2 : index
      %c0_95 = arith.constant 0 : index
      %107 = vector.load %arg5[%c1_93, %c2_94, %c0_95] : memref<3x3x64xf32, #tpu.memory_space<vmem>>, vector<1x1x64xf32>
      %108 = vector.broadcast %107 : vector<1x1x64xf32> to vector<1x16x64xf32>
      %109 = arith.mulf %106, %108 : vector<1x16x64xf32>
      %110 = arith.addf %104, %109 : vector<1x16x64xf32>
      %c2_i32 = arith.constant 2 : i32
      %111 = arith.addi %73, %c2_i32 : i32
      %112 = arith.index_cast %111 : i32 to index
      %c0_96 = arith.constant 0 : index
      %c0_97 = arith.constant 0 : index
      %113 = vector.load %arg16[%112, %c0_96, %c0_97] : memref<18x18x64xf32, #tpu.memory_space<vmem>>, vector<1x16x64xf32>
      %c2_98 = arith.constant 2 : index
      %c0_99 = arith.constant 0 : index
      %c0_100 = arith.constant 0 : index
      %114 = vector.load %arg5[%c2_98, %c0_99, %c0_100] : memref<3x3x64xf32, #tpu.memory_space<vmem>>, vector<1x1x64xf32>
      %115 = vector.broadcast %114 : vector<1x1x64xf32> to vector<1x16x64xf32>
      %116 = arith.mulf %113, %115 : vector<1x16x64xf32>
      %117 = arith.addf %110, %116 : vector<1x16x64xf32>
      %118 = arith.index_cast %111 : i32 to index
      %c1_101 = arith.constant 1 : index
      %c0_102 = arith.constant 0 : index
      %119 = vector.load %arg16[%118, %c1_101, %c0_102] : memref<18x18x64xf32, #tpu.memory_space<vmem>>, vector<1x16x64xf32>
      %c2_103 = arith.constant 2 : index
      %c1_104 = arith.constant 1 : index
      %c0_105 = arith.constant 0 : index
      %120 = vector.load %arg5[%c2_103, %c1_104, %c0_105] : memref<3x3x64xf32, #tpu.memory_space<vmem>>, vector<1x1x64xf32>
      %121 = vector.broadcast %120 : vector<1x1x64xf32> to vector<1x16x64xf32>
      %122 = arith.mulf %119, %121 : vector<1x16x64xf32>
      %123 = arith.addf %117, %122 : vector<1x16x64xf32>
      %124 = arith.index_cast %111 : i32 to index
      %c2_106 = arith.constant 2 : index
      %c0_107 = arith.constant 0 : index
      %125 = vector.load %arg16[%124, %c2_106, %c0_107] : memref<18x18x64xf32, #tpu.memory_space<vmem>>, vector<1x16x64xf32>
      %c2_108 = arith.constant 2 : index
      %c2_109 = arith.constant 2 : index
      %c0_110 = arith.constant 0 : index
      %126 = vector.load %arg5[%c2_108, %c2_109, %c0_110] : memref<3x3x64xf32, #tpu.memory_space<vmem>>, vector<1x1x64xf32>
      %127 = vector.broadcast %126 : vector<1x1x64xf32> to vector<1x16x64xf32>
      %128 = arith.mulf %125, %127 : vector<1x16x64xf32>
      %129 = arith.addf %123, %128 : vector<1x16x64xf32>
      %c0_111 = arith.constant 0 : index
      %c0_112 = arith.constant 0 : index
      %130 = vector.load %arg6[%c0_111, %c0_112] : memref<1x64xf32, #tpu.memory_space<vmem>>, vector<1x64xf32>
      %131 = vector.shape_cast %130 : vector<1x64xf32> to vector<1x1x64xf32>
      %132 = vector.broadcast %131 : vector<1x1x64xf32> to vector<1x16x64xf32>
      %133 = arith.mulf %129, %132 : vector<1x16x64xf32>
      %c0_113 = arith.constant 0 : index
      %c0_114 = arith.constant 0 : index
      %134 = vector.load %arg7[%c0_113, %c0_114] : memref<1x64xf32, #tpu.memory_space<vmem>>, vector<1x64xf32>
      %135 = vector.shape_cast %134 : vector<1x64xf32> to vector<1x1x64xf32>
      %136 = vector.broadcast %135 : vector<1x1x64xf32> to vector<1x16x64xf32>
      %137 = arith.addf %133, %136 : vector<1x16x64xf32>
      %cst_115 = arith.constant 3.000000e+00 : f32
      %138 = vector.broadcast %cst_115 : f32 to vector<1x16x64xf32>
      %139 = arith.addf %137, %138 : vector<1x16x64xf32>
      %cst_116 = arith.constant 0.000000e+00 : f32
      %cst_117 = arith.constant 6.000000e+00 : f32
      %140 = vector.broadcast %cst_116 : f32 to vector<1x16x64xf32>
      %141 = arith.maximumf %140, %139 : vector<1x16x64xf32>
      %142 = vector.broadcast %cst_117 : f32 to vector<1x16x64xf32>
      %143 = arith.minimumf %142, %141 : vector<1x16x64xf32>
      %cst_118 = arith.constant 0.166666672 : f32
      %144 = vector.broadcast %cst_118 : f32 to vector<1x16x64xf32>
      %145 = arith.mulf %143, %144 : vector<1x16x64xf32>
      %146 = arith.mulf %137, %145 : vector<1x16x64xf32>
      %147 = arith.truncf %146 : vector<1x16x64xf32> to vector<1x16x64xbf16>
      %148 = arith.index_cast %arg18 : i32 to index
      %c0_119 = arith.constant 0 : index
      %c0_120 = arith.constant 0 : index
      %149 = vector.load %arg17[%148, %c0_119, %c0_120] : memref<16x16x64xbf16, #tpu.memory_space<vmem>>, vector<1x16x64xbf16>
      tpu.vector_store %arg17[%148, %c0_119, %c0_120], %147 {strides = array<i32>} : memref<16x16x64xbf16, #tpu.memory_space<vmem>>, vector<1x16x64xbf16>,
      %cst_121 = arith.constant dense<0.000000e+00> : vector<1x64xf32>
      %150 = vector.multi_reduction <add>, %146, %cst_121 [1] : vector<1x16x64xf32> to vector<1x64xf32>
      %151 = arith.addf %arg19, %150 : vector<1x64xf32>
      scf.yield %151 : vector<1x64xf32>
    }
    %c16_i32_29 = arith.constant 16 : i32
    %c0_30 = arith.constant 0 : index
    %c0_31 = arith.constant 0 : index
    %c0_32 = arith.constant 0 : index
    %32 = vector.load %arg17[%c0_30, %c0_31, %c0_32] : memref<16x16x64xbf16, #tpu.memory_space<vmem>>, vector<16x16x64xbf16>
    %33 = vector.shape_cast %32 : vector<16x16x64xbf16> to vector<256x64xbf16>
    %cst_33 = arith.constant 3.906250e-03 : f32
    %34 = vector.broadcast %cst_33 : f32 to vector<1x64xf32>
    %35 = arith.mulf %31, %34 : vector<1x64xf32>
    %c0_34 = arith.constant 0 : index
    %c0_35 = arith.constant 0 : index
    %36 = vector.load %arg8[%c0_34, %c0_35] : memref<64x64xf32, #tpu.memory_space<vmem>>, vector<64x64xf32>
    %cst_36 = arith.constant dense<0.000000e+00> : vector<1x64xf32>
    %37 = tpu.matmul %35, %36, %cst_36 {dimension_numbers = #tpu.dot_dimension_numbers<[1], [0], [0], [1], [0, 0, 1, 1], [], []>} : vector<1x64xf32>, vector<64x64xf32>, vector<1x64xf32> -> vector<1x64xf32>
    %c0_37 = arith.constant 0 : index
    %c0_38 = arith.constant 0 : index
    %38 = vector.load %arg9[%c0_37, %c0_38] : memref<1x64xf32, #tpu.memory_space<vmem>>, vector<1x64xf32>
    %39 = arith.addf %37, %38 : vector<1x64xf32>
    %cst_39 = arith.constant 0.000000e+00 : f32
    %40 = vector.broadcast %cst_39 : f32 to vector<1x64xf32>
    %41 = arith.maximumf %39, %40 : vector<1x64xf32>
    %c0_40 = arith.constant 0 : index
    %c0_41 = arith.constant 0 : index
    %42 = vector.load %arg10[%c0_40, %c0_41] : memref<64x64xf32, #tpu.memory_space<vmem>>, vector<64x64xf32>
    %cst_42 = arith.constant dense<0.000000e+00> : vector<1x64xf32>
    %43 = tpu.matmul %41, %42, %cst_42 {dimension_numbers = #tpu.dot_dimension_numbers<[1], [0], [0], [1], [0, 0, 1, 1], [], []>} : vector<1x64xf32>, vector<64x64xf32>, vector<1x64xf32> -> vector<1x64xf32>
    %c0_43 = arith.constant 0 : index
    %c0_44 = arith.constant 0 : index
    %44 = vector.load %arg11[%c0_43, %c0_44] : memref<1x64xf32, #tpu.memory_space<vmem>>, vector<1x64xf32>
    %45 = arith.addf %43, %44 : vector<1x64xf32>
    %cst_45 = arith.constant 3.000000e+00 : f32
    %46 = vector.broadcast %cst_45 : f32 to vector<1x64xf32>
    %47 = arith.addf %45, %46 : vector<1x64xf32>
    %cst_46 = arith.constant 0.000000e+00 : f32
    %cst_47 = arith.constant 6.000000e+00 : f32
    %48 = vector.broadcast %cst_46 : f32 to vector<1x64xf32>
    %49 = arith.maximumf %48, %47 : vector<1x64xf32>
    %50 = vector.broadcast %cst_47 : f32 to vector<1x64xf32>
    %51 = arith.minimumf %50, %49 : vector<1x64xf32>
    %cst_48 = arith.constant 0.166666672 : f32
    %52 = vector.broadcast %cst_48 : f32 to vector<1x64xf32>
    %53 = arith.mulf %51, %52 : vector<1x64xf32>
    %54 = arith.truncf %53 : vector<1x64xf32> to vector<1x64xbf16>
    %55 = vector.broadcast %54 : vector<1x64xbf16> to vector<256x64xbf16>
    %56 = arith.mulf %33, %55 : vector<256x64xbf16>
    %c0_49 = arith.constant 0 : index
    %c0_50 = arith.constant 0 : index
    %57 = vector.load %arg12[%c0_49, %c0_50] : memref<64x16xbf16, #tpu.memory_space<vmem>>, vector<64x16xbf16>
    %cst_51 = arith.constant dense<0.000000e+00> : vector<256x16xf32>
    %58 = tpu.matmul %56, %57, %cst_51 {dimension_numbers = #tpu.dot_dimension_numbers<[1], [0], [0], [1], [0, 0, 1, 1], [], []>} : vector<256x64xbf16>, vector<64x16xbf16>, vector<256x16xf32> -> vector<256x16xf32>
    %c0_52 = arith.constant 0 : index
    %c0_53 = arith.constant 0 : index
    %59 = vector.load %arg13[%c0_52, %c0_53] : memref<1x16xf32, #tpu.memory_space<vmem>>, vector<1x16xf32>
    %60 = vector.broadcast %59 : vector<1x16xf32> to vector<256x16xf32>
    %61 = arith.mulf %58, %60 : vector<256x16xf32>
    %c0_54 = arith.constant 0 : index
    %c0_55 = arith.constant 0 : index
    %62 = vector.load %arg14[%c0_54, %c0_55] : memref<1x16xf32, #tpu.memory_space<vmem>>, vector<1x16xf32>
    %63 = vector.broadcast %62 : vector<1x16xf32> to vector<256x16xf32>
    %64 = arith.addf %61, %63 : vector<256x16xf32>
    %c0_56 = arith.constant 0 : index
    %c0_57 = arith.constant 0 : index
    %c0_58 = arith.constant 0 : index
    %c0_59 = arith.constant 0 : index
    %65 = vector.load %arg1[%c0_56, %c0_57, %c0_58, %c0_59] : memref<1x16x16x16xf32, #tpu.memory_space<vmem>>, vector<1x16x16x16xf32>
    %66 = vector.shape_cast %65 : vector<1x16x16x16xf32> to vector<16x16x16xf32>
    %67 = vector.shape_cast %66 : vector<16x16x16xf32> to vector<256x16xf32>
    %68 = arith.addf %64, %67 : vector<256x16xf32>
    %69 = vector.shape_cast %68 : vector<256x16xf32> to vector<16x16x16xf32>
    %c0_60 = arith.constant 0 : index
    %c0_61 = arith.constant 0 : index
    %c0_62 = arith.constant 0 : index
    %c0_63 = arith.constant 0 : index
    %70 = vector.load %arg15[%c0_60, %c0_61, %c0_62, %c0_63] : memref<1x16x16x16xf32, #tpu.memory_space<vmem>>, vector<1x16x16x16xf32>
    %71 = vector.shape_cast %70 : vector<1x16x16x16xf32> to vector<16x16x16xf32>
    %72 = vector.shape_cast %69 : vector<16x16x16xf32> to vector<1x16x16x16xf32>
    tpu.vector_store %arg15[%c0_60, %c0_61, %c0_62, %c0_63], %72 {strides = array<i32>} : memref<1x16x16x16xf32, #tpu.memory_space<vmem>>, vector<1x16x16x16xf32>,
    return
  }
  func.func @transform_0(%arg0: i32) -> (i32, i32, i32, i32) {
    %c0_i32 = arith.constant 0 : i32
    %c0_i32_0 = arith.constant 0 : i32
    %c0_i32_1 = arith.constant 0 : i32
    %c0_i32_2 = arith.constant 0 : i32
    return %arg0, %c0_i32, %c0_i32_0, %c0_i32_1 : i32, i32, i32, i32
  }
  func.func @transform_1(%arg0: i32) -> (i32, i32) {
    %c0_i32 = arith.constant 0 : i32
    %c0_i32_0 = arith.constant 0 : i32
    %c0_i32_1 = arith.constant 0 : i32
    return %c0_i32, %c0_i32_0 : i32, i32
  }
  func.func @transform_2(%arg0: i32) -> (i32, i32) {
    %c0_i32 = arith.constant 0 : i32
    %c0_i32_0 = arith.constant 0 : i32
    %c0_i32_1 = arith.constant 0 : i32
    return %c0_i32, %c0_i32_0 : i32, i32
  }
  func.func @transform_3(%arg0: i32) -> (i32, i32) {
    %c0_i32 = arith.constant 0 : i32
    %c0_i32_0 = arith.constant 0 : i32
    %c0_i32_1 = arith.constant 0 : i32
    return %c0_i32, %c0_i32_0 : i32, i32
  }
  func.func @transform_4(%arg0: i32) -> (i32, i32, i32) {
    %c0_i32 = arith.constant 0 : i32
    %c0_i32_0 = arith.constant 0 : i32
    %c0_i32_1 = arith.constant 0 : i32
    %c0_i32_2 = arith.constant 0 : i32
    return %c0_i32, %c0_i32_0, %c0_i32_1 : i32, i32, i32
  }
  func.func @transform_5(%arg0: i32) -> (i32, i32) {
    %c0_i32 = arith.constant 0 : i32
    %c0_i32_0 = arith.constant 0 : i32
    %c0_i32_1 = arith.constant 0 : i32
    return %c0_i32, %c0_i32_0 : i32, i32
  }
  func.func @transform_6(%arg0: i32) -> (i32, i32) {
    %c0_i32 = arith.constant 0 : i32
    %c0_i32_0 = arith.constant 0 : i32
    %c0_i32_1 = arith.constant 0 : i32
    return %c0_i32, %c0_i32_0 : i32, i32
  }
  func.func @transform_7(%arg0: i32) -> (i32, i32) {
    %c0_i32 = arith.constant 0 : i32
    %c0_i32_0 = arith.constant 0 : i32
    %c0_i32_1 = arith.constant 0 : i32
    return %c0_i32, %c0_i32_0 : i32, i32
  }
  func.func @transform_8(%arg0: i32) -> (i32, i32) {
    %c0_i32 = arith.constant 0 : i32
    %c0_i32_0 = arith.constant 0 : i32
    %c0_i32_1 = arith.constant 0 : i32
    return %c0_i32, %c0_i32_0 : i32, i32
  }
  func.func @transform_9(%arg0: i32) -> (i32, i32) {
    %c0_i32 = arith.constant 0 : i32
    %c0_i32_0 = arith.constant 0 : i32
    %c0_i32_1 = arith.constant 0 : i32
    return %c0_i32, %c0_i32_0 : i32, i32
  }
  func.func @transform_10(%arg0: i32) -> (i32, i32) {
    %c0_i32 = arith.constant 0 : i32
    %c0_i32_0 = arith.constant 0 : i32
    %c0_i32_1 = arith.constant 0 : i32
    return %c0_i32, %c0_i32_0 : i32, i32
  }
  func.func @transform_11(%arg0: i32) -> (i32, i32) {
    %c0_i32 = arith.constant 0 : i32
    %c0_i32_0 = arith.constant 0 : i32
    %c0_i32_1 = arith.constant 0 : i32
    return %c0_i32, %c0_i32_0 : i32, i32
  }
  func.func @transform_12(%arg0: i32) -> (i32, i32) {
    %c0_i32 = arith.constant 0 : i32
    %c0_i32_0 = arith.constant 0 : i32
    %c0_i32_1 = arith.constant 0 : i32
    return %c0_i32, %c0_i32_0 : i32, i32
  }
  func.func @transform_13(%arg0: i32) -> (i32, i32) {
    %c0_i32 = arith.constant 0 : i32
    %c0_i32_0 = arith.constant 0 : i32
    %c0_i32_1 = arith.constant 0 : i32
    return %c0_i32, %c0_i32_0 : i32, i32
  }
  func.func @transform_14(%arg0: i32) -> (i32, i32, i32, i32) {
    %c0_i32 = arith.constant 0 : i32
    %c0_i32_0 = arith.constant 0 : i32
    %c0_i32_1 = arith.constant 0 : i32
    %c0_i32_2 = arith.constant 0 : i32
    return %arg0, %c0_i32, %c0_i32_0, %c0_i32_1 : i32, i32, i32, i32
  }
}

</mosaic_0001>

<bundles_post_ra>
// kernel: inverted_residual_forward_nhwc.1
= control target key start
LH: loop header
LB: loop body
LE: loop exit
PB: predicated region body
PF: predicated region fallthrough
CT: control target
= control target key end

     0   :  { %s4124_s0 = inlined_call_operand.hbm [shape: f32[2,16,16,16], index: 0, kind: input, shape index: {}]   ;;  %s4125_s1 = inlined_call_operand.hbm [shape: bf16[16,64], index: 1, kind: input, shape index: {}]   ;;  %s4126_s2 = inlined_call_operand.hbm [shape: f32[1,64], index: 2, kind: input, shape index: {}]   ;;  %s4127_s3 = inlined_call_operand.hbm [shape: f32[1,64], index: 3, kind: input, shape index: {}]   ;;  %s4128_s4 = inlined_call_operand.vmem [shape: f32[3,3,64], index: 4, kind: input, shape index: {}]   ;;  %s4129_s5 = inlined_call_operand.hbm [shape: f32[1,64], index: 5, kind: input, shape index: {}]   ;;  %s4130_s6 = inlined_call_operand.hbm [shape: f32[1,64], index: 6, kind: input, shape index: {}]   ;;  %s4131_s7 = inlined_call_operand.vmem [shape: f32[64,64], index: 7, kind: input, shape index: {}]   ;;  %s4132_s8 = inlined_call_operand.hbm [shape: f32[1,64], index: 8, kind: input, shape index: {}]   ;;  %s4133_s9 = inlined_call_operand.hbm [shape: f32[64,64], index: 9, kind: input, shape index: {}]   ;;  %s4134_s10 = inlined_call_operand.hbm [shape: f32[1,64], index: 10, kind: input, shape index: {}]   ;;  %s4135_s11 = inlined_call_operand.vmem [shape: bf16[64,16], index: 11, kind: input, shape index: {}]   ;;  %s4136_s12 = inlined_call_operand.hbm [shape: f32[1,16], index: 12, kind: input, shape index: {}]   ;;  %s4137_s13 = inlined_call_operand.hbm [shape: f32[1,16], index: 13, kind: input, shape index: {}]   ;;  %s4138_s14 = inlined_call_operand.hbm [shape: f32[2,16,16,16], index: 14, kind: output, shape index: {}]  }
   0x1   :  { %4148 = sst [smem:[#allocation30_spill]] %s4125_s1 }
   0x2   :  { %4149 = sst [smem:[#allocation31_spill]] %s4126_s2 }
   0x3   :  { %4150 = sst [smem:[#allocation32_spill]] %s4127_s3 }
   0x4   :  { %4151 = sst [smem:[#allocation33_spill]] %s4129_s5 }
   0x5   :  { %4152 = sst [smem:[#allocation34_spill]] %s4130_s6 }
   0x6   :  { %4153 = sst [smem:[#allocation35_spill]] %s4131_s7 }
   0x7   :  { %4154 = sst [smem:[#allocation36_spill]] %s4135_s11 }
   0x8   :  { %4155 = sst [smem:[#allocation37_spill]] %s4138_s14 }
   0x9   :  { %19 = vsyncpa [#allocation5], 0 }
   0xa   :  { %21 = vsyncpa [#allocation5 + $0x1], 0 }
   0xb   :  { %22 = vsyncpa [#allocation8], 0 }
   0xc   :  { %23 = vsyncpa [#allocation11], 0 }
   0xd   :  { %24 = vsyncpa [#allocation14], 0 }
   0xe   :  { %25 = vsyncpa [#allocation17], 0 }
   0xf   :  { %26 = vsyncpa [#allocation20], 0 }
  0x10   :  { %27 = vsyncpa [#allocation6], 0 }
  0x11   :  { %29 = vsyncpa [#allocation6 + $0x1], 0  ;;  %s3266_s29 = smov 0   ;;  %s3268_s30 = smov 0  }
  0x12   :  { %s3270_s15 = smov 0   ;;  %s3272_s16 = smov 0  }
  0x13 LB: > { %s3171_s17 = smov [#allocation7]   ;;  %s3287_s19 = sadd.s32 4294967295, %s3161_s16   ;;  %s3161_s16 = sphi %s3272_s16, %s4194_s16   ;;  %s3157_s15 = sphi %s3270_s15, %s4193_s15   ;;  %s3153_s30 = sphi %s3268_s30, %s4192_s30   ;;  %s3149_s29 = sphi %s3266_s29, %s4191_s29  }
  0x14   : > { %s377_s18 = sshll.u32 %s3171_s17, 4  ;;  %p2307_p0 = scmp.ge.s32.totalorder %s3161_s16, 1  ;;  %s378_s18 = int_to_ptr.vmem [resolvable:$true] %s377_s18 }
  0x15   : > { %p4142_p1 = scmp.eq.s32.totalorder %s3287_s19, 0  ;;  %p365_p2 = scmp.lt.s32.totalorder %s3161_s16, 3 }
  0x16   : > { %s3172_s21 = smov [#allocation10]   ;;  %s3173_s24 = smov [#allocation13]  }
  0x17   : > { %p3292_p3 = pnand %p2307_p0, %p365_p2  ;;  %s402_s22 = sshll.u32 %s3172_s21, 4  ;;  %s403_s22 = int_to_ptr.vmem [resolvable:$true] %s402_s22 }
  0x18   : > { %s427_s25 = sshll.u32 %s3173_s24, 4  ;;  %s2792_s27 = scalar_lea.vmem %s378_s18, 128  ;;  %s3305_s25 = int_to_ptr.vmem [resolvable:$true] %s427_s25 }
  0x19   : > { %s4156_s20 = scalar_select %p3292_p3, 1, 0 }
  0x1a   : > { %p2649_p5 = pneg %p3292_p3  ;;  %p2793_p8 = scmp.ne.s32.totalorder %s378_s18, %s2792_s27 }
  0x1b   : > { %p2800_p11 = scmp.lt.s32.totalorder %s378_s18, %s378_s18  ;;  %p2801_p12 = scmp.lt.s32.totalorder %s2792_s27, %s2792_s27 }
  0x1c   : > { %p3301_p6 = pnand %p2649_p5, %p4142_p1 }
  0x1d   : > { %p2802_p13 = por %p2801_p12, %p2800_p11 }
  0x1e   : > { %p3309_p7 = pneg %p3301_p6 }
  0x20   : > { %p2795_p9 = pnand %p2793_p8, %p3309_p7 }
  0x22   : > { %p2796_p10 = pneg %p2795_p9 }
  0x24   : > { %p2803_p0 = pnand %p2802_p13, %p2796_p10 }
  0x26   : > { %2806 = shalt.err (!%p2803_p0)
}
  0x27   : > { %s3174_s28 = smov 64   ;;  %s3175_s17 = smov 4  }
  0x28   : > { %s4159_s1 = sld [smem:[#allocation30_spill]]  ;;  %s2818_s14 = scalar_lea.vmem %s403_s22, 16 }
  0x29   : > { %p2819_p2 = scmp.ne.s32.totalorder %s403_s22, %s2818_s14  ;;  %s2825_s11 = scalar_lea.vmem %s403_s22, 32 }
  0x2a   : > { %p2826_p9 = scmp.lt.s32.totalorder %s403_s22, %s403_s22  ;;  %p2827_p4 = scmp.lt.s32.totalorder %s2825_s11, %s2818_s14 }
  0x2b   : > { %p2821_p5 = pnand %p2819_p2, %p3309_p7 }
  0x2c   : > { %p2828_p11 = por %p2827_p4, %p2826_p9 }
  0x2d   : > { %p2822_p8 = pneg %p2821_p5 }
  0x2e   : > { %2652 = dma.hbm_to_vmem [thread:$0]  (!%p3301_p6), %s4159_s1, 128, %s378_s18, [#allocation8], %s3174_s28, %s3174_s28, %s3175_s17  }
  0x2f   : > { %p2829_p10 = pnand %p2828_p11, %p2822_p8 }
  0x31   : > { %2832 = shalt.err (!%p2829_p10)
}
  0x32   : > { %s4160_s3 = sld [smem:[#allocation32_spill]]  ;;  %s2844_s18 = scalar_lea.vmem %s3305_s25, 16 }
  0x33   : > { %p2845_p12 = scmp.ne.s32.totalorder %s3305_s25, %s2844_s18  ;;  %s2851_s11 = scalar_lea.vmem %s3305_s25, 32 }
  0x34   : > { %p2852_p4 = scmp.lt.s32.totalorder %s3305_s25, %s3305_s25  ;;  %p2853_p2 = scmp.lt.s32.totalorder %s2851_s11, %s2844_s18 }
  0x35   : > { %p2847_p13 = pnand %p2845_p12, %p3309_p7 }
  0x36   : > { %p2854_p5 = por %p2853_p2, %p2852_p4 }
  0x37   : > { %p2848_p0 = pneg %p2847_p13 }
  0x38   : > { %2658 = dma.hbm_to_vmem [thread:$0]  (!%p3301_p6), %s4160_s3, 16, %s403_s22, [#allocation11]  }
  0x39   : > { %p2855_p8 = pnand %p2854_p5, %p2848_p0 }
  0x3b   : > { %2858 = shalt.err (!%p2855_p8)
}
  0x3c   : > { %s4161_s6 = sld [smem:[#allocation34_spill]]  ;;  %s3176_s22 = smov [#allocation16]  }
  0x3d   : > { %s451_s28 = sshll.u32 %s3176_s22, 4  ;;  %s452_s28 = int_to_ptr.vmem [resolvable:$true] %s451_s28 }
  0x3e   : > { %s2870_s17 = scalar_lea.vmem %s452_s28, 1024  ;;  %p2878_p12 = scmp.lt.s32.totalorder %s452_s28, %s452_s28 }
  0x3f   : > { %p2871_p9 = scmp.ne.s32.totalorder %s452_s28, %s2870_s17  ;;  %p2879_p13 = scmp.lt.s32.totalorder %s2870_s17, %s2870_s17 }
  0x41   : > { %p2873_p11 = pnand %p2871_p9, %p3309_p7  ;;  %p2880_p0 = por %p2879_p13, %p2878_p12 }
  0x42   : > { %2664 = dma.hbm_to_vmem [thread:$0]  (!%p3301_p6), %s4161_s6, 16, %s3305_s25, [#allocation14]  }
  0x43   : > { %p2874_p10 = pneg %p2873_p11 }
  0x45   : > { %p2881_p4 = pnand %p2880_p0, %p2874_p10 }
  0x47   : > { %2884 = shalt.err (!%p2881_p4)
}
  0x48   : > { %s4144_s21 = smov 128   ;;  %s4145_s24 = smov 8  }
  0x49   : > { %2670 = dma.hbm_to_vmem [thread:$0]  (!%p3301_p6), %s4133_s9, 1024, %s452_s28, [#allocation17], %s4144_s21, %s4144_s21, %s4145_s24  }
  0x4a   : > { %s3179_s18 = smov [#allocation19]   ;;  %s3180_s7 = smov [#allocation9]  }
  0x4b   : > { %s479_s11 = sshll.u32 %s3179_s18, 4  ;;  %s391_s14 = sshll.u32 %s3180_s7, 4  ;;  %s480_s11 = int_to_ptr.vmem [resolvable:$true] %s479_s11  ;;  %s392_s14 = int_to_ptr.vmem [resolvable:$true] %s391_s14 }
  0x4c   : > { %s2896_s22 = scalar_lea.vmem %s480_s11, 16  ;;  %s2903_s17 = scalar_lea.vmem %s480_s11, 32 }
  0x4d   : > { %p2897_p2 = scmp.ne.s32.totalorder %s480_s11, %s2896_s22  ;;  %p2904_p9 = scmp.lt.s32.totalorder %s480_s11, %s480_s11 }
  0x4e   : > { %p2905_p11 = scmp.lt.s32.totalorder %s2903_s17, %s2896_s22 }
  0x4f   : > { %p2899_p5 = pnand %p2897_p2, %p3309_p7 }
  0x50   : > { %p2906_p10 = por %p2905_p11, %p2904_p9 }
  0x51   : > { %p2900_p8 = pneg %p2899_p5 }
  0x53   : > { %p2907_p12 = pnand %p2906_p10, %p2900_p8 }
  0x55   : > { %2910 = shalt.err (!%p2907_p12)
}
  0x56   : > { %2676 = dma.hbm_to_vmem [thread:$0]  (!%p3301_p6), %s4136_s12, 16, %s480_s11, [#allocation20]  }
  0x57   : > { %s2922_s27 = scalar_lea.vmem %s392_s14, 16  ;;  %s2929_s18 = scalar_lea.vmem %s392_s14, 32 }
  0x58   : > { %p2923_p13 = scmp.ne.s32.totalorder %s392_s14, %s2922_s27  ;;  %p2930_p2 = scmp.lt.s32.totalorder %s392_s14, %s392_s14 }
  0x59   : > { %p2931_p5 = scmp.lt.s32.totalorder %s2929_s18, %s2922_s27 }
  0x5a   : > { %p2925_p0 = pnand %p2923_p13, %p3309_p7 }
  0x5b   : > { %p2932_p1 = por %p2931_p5, %p2930_p2 }
  0x5c   : > { %p2926_p4 = pneg %p2925_p0 }
  0x5e   : > { %p2933_p3 = pnand %p2932_p1, %p2926_p4 }
  0x60   : > { %2936 = shalt.err (!%p2933_p3)
}
  0x61   : > { %s4162_s2 = sld [smem:[#allocation31_spill]]  ;;  %s3181_s17 = smov [#allocation12]  }
  0x62   : > { %s416_s11 = sshll.u32 %s3181_s17, 4  ;;  %s3182_s28 = smov [#allocation15]   ;;  %s417_s11 = int_to_ptr.vmem [resolvable:$true] %s416_s11 }
  0x63   : > { %s441_s25 = sshll.u32 %s3182_s28, 4  ;;  %s2948_s21 = scalar_lea.vmem %s417_s11, 16  ;;  %s442_s25 = int_to_ptr.vmem [resolvable:$true] %s441_s25 }
  0x64   : > { %p2949_p8 = scmp.ne.s32.totalorder %s417_s11, %s2948_s21  ;;  %s2955_s27 = scalar_lea.vmem %s417_s11, 32 }
  0x65   : > { %p2956_p1 = scmp.lt.s32.totalorder %s417_s11, %s417_s11  ;;  %p2957_p3 = scmp.lt.s32.totalorder %s2955_s27, %s2948_s21 }
  0x66   : > { %p2951_p9 = pnand %p2949_p8, %p3309_p7 }
  0x67   : > { %2655 = dma.hbm_to_vmem [thread:$0]  (!%p3301_p6), %s4162_s2, 16, %s392_s14, [#allocation8]  }
  0x68   : > { %p2952_p11 = pneg %p2951_p9  ;;  %p2958_p10 = por %p2957_p3, %p2956_p1 }
  0x6a   : > { %p2959_p12 = pnand %p2958_p10, %p2952_p11 }
  0x6c   : > { %2962 = shalt.err (!%p2959_p12)
}
  0x6d   : > { %s4163_s5 = sld [smem:[#allocation33_spill]]  ;;  %s2974_s7 = scalar_lea.vmem %s442_s25, 16 }
  0x6e   : > { %p2975_p13 = scmp.ne.s32.totalorder %s442_s25, %s2974_s7  ;;  %s2981_s22 = scalar_lea.vmem %s442_s25, 32 }
  0x6f   : > { %p2982_p2 = scmp.lt.s32.totalorder %s442_s25, %s442_s25  ;;  %p2983_p5 = scmp.lt.s32.totalorder %s2981_s22, %s2974_s7 }
  0x70   : > { %p2977_p0 = pnand %p2975_p13, %p3309_p7 }
  0x71   : > { %p2984_p8 = por %p2983_p5, %p2982_p2 }
  0x72   : > { %p2978_p4 = pneg %p2977_p0 }
  0x73   : > { %2661 = dma.hbm_to_vmem [thread:$0]  (!%p3301_p6), %s4163_s5, 16, %s417_s11, [#allocation11]  }
  0x74   : > { %p2985_p9 = pnand %p2984_p8, %p2978_p4 }
  0x76   : > { %2988 = shalt.err (!%p2985_p9)
}
  0x77   : > { %2667 = dma.hbm_to_vmem [thread:$0]  (!%p3301_p6), %s4132_s8, 16, %s442_s25, [#allocation14]  }
  0x78   : > { %s3183_s28 = smov [#allocation18]   ;;  %s3184_s27 = smov [#allocation21]  }
  0x79   : > { %s465_s11 = sshll.u32 %s3183_s28, 4  ;;  %s490_s14 = sshll.u32 %s3184_s27, 4  ;;  %s466_s11 = int_to_ptr.vmem [resolvable:$true] %s465_s11  ;;  %s491_s14 = int_to_ptr.vmem [resolvable:$true] %s490_s14 }
  0x7a   : > { %s3000_s18 = scalar_lea.vmem %s466_s11, 16  ;;  %s3007_s7 = scalar_lea.vmem %s466_s11, 32 }
  0x7b   : > { %p3001_p11 = scmp.ne.s32.totalorder %s466_s11, %s3000_s18  ;;  %p3008_p10 = scmp.lt.s32.totalorder %s466_s11, %s466_s11 }
  0x7c   : > { %p3009_p12 = scmp.lt.s32.totalorder %s3007_s7, %s3000_s18 }
  0x7d   : > { %p3003_p1 = pnand %p3001_p11, %p3309_p7 }
  0x7e   : > { %p3010_p13 = por %p3009_p12, %p3008_p10 }
  0x7f   : > { %p3004_p3 = pneg %p3003_p1 }
  0x81   : > { %p3011_p0 = pnand %p3010_p13, %p3004_p3 }
  0x83   : > { %3014 = shalt.err (!%p3011_p0)
}
  0x84   : > { %2673 = dma.hbm_to_vmem [thread:$0]  (!%p3301_p6), %s4134_s10, 16, %s466_s11, [#allocation17]  }
  0x85   : > { %s3026_s21 = scalar_lea.vmem %s491_s14, 16  ;;  %s3033_s17 = scalar_lea.vmem %s491_s14, 32 }
  0x86   : > { %p3027_p4 = scmp.ne.s32.totalorder %s491_s14, %s3026_s21  ;;  %p3034_p8 = scmp.lt.s32.totalorder %s491_s14, %s491_s14 }
  0x87   : > { %p3035_p9 = scmp.lt.s32.totalorder %s3033_s17, %s3026_s21 }
  0x88   : > { %p3029_p2 = pnand %p3027_p4, %p3309_p7 }
  0x89   : > { %p3036_p11 = por %p3035_p9, %p3034_p8 }
  0x8a   : > { %p3030_p5 = pneg %p3029_p2 }
  0x8c   : > { %p3037_p1 = pnand %p3036_p11, %p3030_p5 }
  0x8e   : > { %3040 = shalt.err (!%p3037_p1)
}
  0x8f   : > { %2679 = dma.hbm_to_vmem [thread:$0]  (!%p3301_p6), %s4137_s13, 16, %s491_s14, [#allocation20]  }
  0x90   : > { %s2306_s26 = sadd.s32 4294967294, %s3161_s16   ;;  %s3394_s23 = sadd.s32 1, %s3161_s16  }
  0x91   : > { %s39_s11 = ssub.s32 %s3161_s16, %s3394_s23  ;;  %s42_s18 = sadd.s32 1, %s3157_s15 }
  0x92   : > { %p40_p7 = scmp.eq.s32.totalorder %s39_s11, 0  ;;  %p49_p3 = scmp.ne.s32.totalorder %s3157_s15, %s3153_s30 }
  0x93   : > { %p50_p10 = scmp.eq.s32.totalorder %s3161_s16, 0  ;;  %p55_p12 = scmp.ne.s32.totalorder %s3153_s30, %s3149_s29 }
  0x94   : > { %s3405_s7 = scalar_select %p40_p7, %s3157_s15, %s42_s18  }
  0x95   : > { %p3407_p13 = por %p50_p10, %p49_p3  ;;  %p4165_p0 = scmp.eq.s32.totalorder %s3287_s19, 0 }
  0x96   : > { %p352_p4 = scmp.eq.s32.totalorder %s3287_s19, 1  ;;  %p358_p2 = scmp.eq.s32.totalorder %s2306_s26, 1 }
  0x97   : > { %p3413_p6 = por %p4165_p0, %p55_p12  ;;  %p2698_p5 = scmp.lt.s32.totalorder %s3161_s16, 2 }
  0x98   : > { %s501_s22 = sand.u32 1, %s3157_s15   ;;  %p3420_p8 = por %p352_p4, %p49_p3 }
  0x99   : > { %s4166_s14 = scalar_select %p3413_p6, 1, 0 }
  0x9a   : > { %s4167_s21 = scalar_select %p3420_p8, 1, 0 }
  0x9b   : > { %p3424_p9 = por %p358_p2, %p55_p12  ;;  %s2319_s28 = sshll.u32 %s501_s22, 8 }
  0x9c   : > { %s2433_s27 = sshll.u32 %s3161_s16, 12  ;;  %s505_s26 = scalar_lea.vmem [#allocation4], %s2319_s28 }
  0x9d   : > { %s4168_s17 = scalar_select %p3424_p9, 1, 0 }
  0x9e   : > { %s3432_s24 = scalar_lea.hbm %s4124_s0, %s2433_s27  ;;  %s512_s1 = sshll.u32 %s505_s26, 4  ;;  %s3434_s1 = int_to_ptr.vmem [resolvable:$true] %s512_s1 }
  0x9f   : > { %p3438_p11 = pnand %p2698_p5, %p3407_p13  ;;  %s3442_s3 = scalar_lea.sflag [#allocation5], %s501_s22 }
  0xa0   : > { %s3041_s5 = scalar_lea.hbm %s3432_s24, 4096  ;;  %s3046_s28 = scalar_lea.hbm %s4124_s0, 8192 }
  0xa1   : > { %p3042_p1 = scmp.ne.s32.totalorder %s3432_s24, %s3041_s5  ;;  %p3043_p7 = pneg %p3438_p11 }
  0xa2   : > { %p3047_p12 = scmp.lt.s32.totalorder %s3432_s24, %s4124_s0  ;;  %p3048_p13 = scmp.lt.s32.totalorder %s3046_s28, %s3041_s5 }
  0xa3   : > { %p3044_p3 = pnand %p3043_p7, %p3042_p1 }
  0xa4   : > { %p3049_p0 = por %p3048_p13, %p3047_p12 }
  0xa5   : > { %p3045_p10 = pneg %p3044_p3 }
  0xa7   : > { %p3050_p4 = pnand %p3049_p0, %p3045_p10 }
  0xa9   : > { %3053 = shalt.err (!%p3050_p4)
}
  0xaa   : > { %s3054_s25 = scalar_lea.vmem %s3434_s1, 4096  ;;  %s3185_s22 = smov [#allocation4]  }
  0xab   : > { %p3055_p2 = scmp.ne.s32.totalorder %s3434_s1, %s3054_s25  ;;  %s3059_s6 = sshll.u32 %s3185_s22, 4  ;;  %s3060_s6 = int_to_ptr.vmem [resolvable:$false] %s3059_s6 }
  0xac   : > { %s3061_s27 = scalar_lea.vmem %s3060_s6, 8192  ;;  %p3062_p3 = scmp.lt.s32.totalorder %s3434_s1, %s3060_s6 }
  0xad   : > { %p3057_p5 = pnand %p3055_p2, %p3043_p7  ;;  %p3063_p9 = scmp.lt.s32.totalorder %s3061_s27, %s3054_s25 }
  0xaf   : > { %p3058_p1 = pneg %p3057_p5  ;;  %p3064_p8 = por %p3063_p9, %p3062_p3 }
  0xb1   : > { %p3065_p6 = pnand %p3064_p8, %p3058_p1 }
  0xb3   : > { %3068 = shalt.err (!%p3065_p6)
}
  0xb4   : > { %s4170_s5 = smov 8   ;;  %s4171_s11 = smov 128  }
  0xb5   : > { %2683 = dma.hbm_to_vmem [thread:$0]  (!%p3438_p11), %s3432_s24, 4096, %s3434_s1, %s3442_s3, %s4171_s11, %s4171_s11, %s4170_s5  }
  0xb6   : > { %p4172_p7 = scmp.ne.s32.totalorder %s4156_s20, 0 }
  0xb7   : > { %s3469_s28 = sand.u32 (!%p4172_p7), 1, %s3153_s30   ;;  %p4173_p6 = scmp.ne.s32.totalorder (!%p4172_p7), %s4166_s14, 0 }
  0xb8   : > { %524 = sbr.rel (%p4172_p7) target bundleno = 1238 (0x4d6), region = 76  ;;  %s2323_s6 = sshll.u32 (!%p4172_p7), %s3469_s28, 8 }
  0xb9   : > { %s527_s18 = scalar_lea.sflag (!%p4172_p7), [#allocation5], %s3469_s28  ;;  %s3475_s2 = scalar_lea.vmem (!%p4172_p7), [#allocation4], %s2323_s6 }
  0xbd   : > { %3120 = dma.done.wait (%p4173_p6), %s527_s18, 4096  }
  0xbe   : > { %3122 = vsyncadd (%p4173_p6), %s527_s18, 4294963200  ;;  %p4174_p8 = scmp.eq.s32.totalorder %s3287_s19, 0 }
  0xc0   : > { %3124 = dma.done.wait (%p4174_p8), [#allocation8], 144   ;;  %p4175_p9 = pmov %p4174_p8 }
  0xc1   : > { %p4176_p11 = pmov %p4174_p8 }
  0xc2   : > { %3126 = vsyncadd (%p4175_p9), [#allocation8], 4294967152 }
  0xc3   : > { %3128 = dma.done.wait (%p4176_p11), [#allocation11], 32   ;;  %p4177_p10 = pmov %p4174_p8 }
  0xc4   : > { %p4178_p12 = pmov %p4174_p8 }
  0xc5   : > { %3130 = vsyncadd (%p4177_p10), [#allocation11], 4294967264 }
  0xc6   : > { %3132 = dma.done.wait (%p4178_p12), [#allocation14], 32   ;;  %p4179_p13 = pmov %p4174_p8 }
  0xc7   : > { %p4180_p0 = pmov %p4174_p8 }
  0xc8   : > { %3134 = vsyncadd (%p4179_p13), [#allocation14], 4294967264 }
  0xc9   : > { %3136 = dma.done.wait (%p4180_p0), [#allocation17], 1040   ;;  %p4181_p4 = pmov %p4180_p0 }
  0xca   : > { %p4182_p2 = pmov %p4180_p0 }
  0xcb   : > { %3138 = vsyncadd (%p4181_p4), [#allocation17], 4294966256 }
  0xcc   : > { %3140 = dma.done.wait (%p4182_p2), [#allocation20], 32   ;;  %p4183_p5 = pmov %p4180_p0 }
  0xcd   : > { %vm1120_vm0 = vcmask 523264   ;;  %vm1123_vm1 = vcmask 517120   ;;  %vm1129_vm2 = vcmask 516096   ;;  %v3186_v0 = vmov 0.0   ;;  %v2776_v1 = vld [vmem:[#allocation7] sm:$0xff]   ;;  %v617_v3 = vld [vmem:[%s3475_s2 + $0x8] sm:$0xff] }
  0xce   : > { %3142 = vsyncadd (%p4183_p5), [#allocation20], 4294967264  ;;  %1121 = vst.msk [vmem:[#allocation2] sm:$0xff] %vm1120_vm0, %v3186_v0  ;;  %v616_v2 = vld [vmem:[%s3475_s2] sm:$0xff]  ;;  %vm672_vm3 = vcmask 130048   ;;  %v618_v4 = vld [vmem:[%s3475_s2 + $0x10] sm:$0xff]  ;;  %2493 = vmatprep.subr.bf16.mxu0 %v2776_v1 }
  0xcf   : > { %1122 = vst.msk [vmem:[#allocation2 + $0x8] sm:$0xff] %vm1120_vm0, %v3186_v0  ;;  %1126 = vst.msk [vmem:[#allocation2 + $0x198] sm:$0xff] %vm1120_vm0, %v3186_v0  ;;  %v648_v5 = vpack.c.bf16 %v617_v3, %v616_v2  ;;  %v619_v6 = vld [vmem:[%s3475_s2 + $0x18] sm:$0xff]  ;;  %v620_v7 = vld [vmem:[%s3475_s2 + $0x20] sm:$0xff]  ;;  %2494 = vmatpush3.bf16.msra.mxu0 %v2776_v1  ;;  %s3733_s1 = scalar_lea.vmem [#allocation22], %s2323_s6  ;;  %s3737_s3 = smov 0  }
  0xd0   : > { %1124 = vst.msk [vmem:[#allocation2 + $0x10] sm:$0x3] %vm1123_vm1, %v3186_v0  ;;  %1128 = vst.msk [vmem:[#allocation2 + $0x1a8] sm:$0x3] %vm1123_vm1, %v3186_v0  ;;  %v621_v8 = vld [vmem:[%s3475_s2 + $0x28] sm:$0xff]  ;;  %v649_v9 = vpack.c.bf16 %v619_v6, %v618_v4  ;;  %v622_v11 = vld [vmem:[%s3475_s2 + $0x30] sm:$0xff] }
  0xd1   : > { %1127 = vst.msk [vmem:[#allocation2 + $0x1a0] sm:$0xff] %vm1120_vm0, %v3186_v0  ;;  %v650_v10 = vpack.c.bf16 %v621_v8, %v620_v7  ;;  %2495 = vmatprep.mubr.msk.bf16.mxu0 %vm672_vm3, %v648_v5  ;;  %v623_v12 = vld [vmem:[%s3475_s2 + $0x38] sm:$0xff]  ;;  %v624_v13 = vld [vmem:[%s3475_s2 + $0x40] sm:$0xff]  ;;  %v625_v14 = vld [vmem:[%s3475_s2 + $0x48] sm:$0xff] }
  0xd2   : > { %1131 = vst.msk [vmem:[#allocation2 + $0x18] sm:$0x1] %vm1129_vm2, %v3186_v0  ;;  %1132 = vst.msk [vmem:[#allocation2 + $0x30] sm:$0x1] %vm1129_vm2, %v3186_v0  ;;  %2496 = vmatmul.mubr.msk.bf16.vlgmr.msra.gmra.mxu0 %vm672_vm3, %v649_v9  ;;  %v651_v15 = vpack.c.bf16 %v623_v12, %v622_v11  ;;  %v652_v16 = vpack.c.bf16 %v625_v14, %v624_v13  ;;  %v626_v17 = vld [vmem:[%s3475_s2 + $0x50] sm:$0xff]  ;;  %v627_v18 = vld [vmem:[%s3475_s2 + $0x58] sm:$0xff] }
  0xd3   : > { %1133 = vst.msk [vmem:[#allocation2 + $0x48] sm:$0x1] %vm1129_vm2, %v3186_v0  ;;  %1134 = vst.msk [vmem:[#allocation2 + $0x60] sm:$0x1] %vm1129_vm2, %v3186_v0  ;;  %2499 = vmatprep.mubr.msk.bf16.mxu0 %vm672_vm3, %v650_v10  ;;  %v628_v19 = vld [vmem:[%s3475_s2 + $0x60] sm:$0xff]  ;;  %v629_v20 = vld [vmem:[%s3475_s2 + $0x68] sm:$0xff]  ;;  %v653_v21 = vpack.c.bf16 %v627_v18, %v626_v17 }
  0xd4   : > { %1135 = vst.msk [vmem:[#allocation2 + $0x78] sm:$0x1] %vm1129_vm2, %v3186_v0  ;;  %1136 = vst.msk [vmem:[#allocation2 + $0x90] sm:$0x1] %vm1129_vm2, %v3186_v0  ;;  %v654_v22 = vpack.c.bf16 %v629_v20, %v628_v19  ;;  %v630_v23 = vld [vmem:[%s3475_s2 + $0x70] sm:$0xff]  ;;  %v631_v24 = vld [vmem:[%s3475_s2 + $0x78] sm:$0xff] }
  0xd5   : > { %1137 = vst.msk [vmem:[#allocation2 + $0xa8] sm:$0x1] %vm1129_vm2, %v3186_v0  ;;  %1138 = vst.msk [vmem:[#allocation2 + $0xc0] sm:$0x1] %vm1129_vm2, %v3186_v0  ;;  %v632_v25 = vld [vmem:[%s3475_s2 + $0x80] sm:$0xff]  ;;  %v633_v26 = vld [vmem:[%s3475_s2 + $0x88] sm:$0xff]  ;;  %v655_v27 = vpack.c.bf16 %v631_v24, %v630_v23 }
  0xd6   : > { %1139 = vst.msk [vmem:[#allocation2 + $0xd8] sm:$0x1] %vm1129_vm2, %v3186_v0  ;;  %1140 = vst.msk [vmem:[#allocation2 + $0xf0] sm:$0x1] %vm1129_vm2, %v3186_v0  ;;  %v656_v28 = vpack.c.bf16 %v633_v26, %v632_v25  ;;  %v634_v29 = vld [vmem:[%s3475_s2 + $0x90] sm:$0xff]  ;;  %v635_v30 = vld [vmem:[%s3475_s2 + $0x98] sm:$0xff] }
  0xd7   : > { %1141 = vst.msk [vmem:[#allocation2 + $0x108] sm:$0x1] %vm1129_vm2, %v3186_v0  ;;  %1142 = vst.msk [vmem:[#allocation2 + $0x120] sm:$0x1] %vm1129_vm2, %v3186_v0  ;;  %v636_v31 = vld [vmem:[%s3475_s2 + $0xa0] sm:$0xff]  ;;  %v637_v32 = vld [vmem:[%s3475_s2 + $0xa8] sm:$0xff]  ;;  %v657_v33 = vpack.c.bf16 %v635_v30, %v634_v29 }
  0xd8   : > { %1143 = vst.msk [vmem:[#allocation2 + $0x138] sm:$0x1] %vm1129_vm2, %v3186_v0  ;;  %1144 = vst.msk [vmem:[#allocation2 + $0x150] sm:$0x1] %vm1129_vm2, %v3186_v0  ;;  %v658_v34 = vpack.c.bf16 %v637_v32, %v636_v31  ;;  %v638_v35 = vld [vmem:[%s3475_s2 + $0xb0] sm:$0xff]  ;;  %v639_v36 = vld [vmem:[%s3475_s2 + $0xb8] sm:$0xff] }
  0xd9   : > { %1145 = vst.msk [vmem:[#allocation2 + $0x168] sm:$0x1] %vm1129_vm2, %v3186_v0  ;;  %1146 = vst.msk [vmem:[#allocation2 + $0x180] sm:$0x1] %vm1129_vm2, %v3186_v0  ;;  %v640_v37 = vld [vmem:[%s3475_s2 + $0xc0] sm:$0xff]  ;;  %v641_v38 = vld [vmem:[%s3475_s2 + $0xc8] sm:$0xff]  ;;  %v659_v39 = vpack.c.bf16 %v639_v36, %v638_v35 }
  0xda   : > { %1149 = vst.msk [vmem:[#allocation2 + $0x29] sm:$0x1] %vm1129_vm2, %v3186_v0  ;;  %1150 = vst.msk [vmem:[#allocation2 + $0x41] sm:$0x1] %vm1129_vm2, %v3186_v0  ;;  %2500 = vmatmul.mubr.msk.bf16.gmra.mxu0 %vm672_vm3, %v651_v15  ;;  %v660_v40 = vpack.c.bf16 %v641_v38, %v640_v37  ;;  %v642_v41 = vld [vmem:[%s3475_s2 + $0xd0] sm:$0xff]  ;;  %v643_v42 = vld [vmem:[%s3475_s2 + $0xd8] sm:$0xff] }
  0xdb   : > { %1151 = vst.msk [vmem:[#allocation2 + $0x59] sm:$0x1] %vm1129_vm2, %v3186_v0  ;;  %1152 = vst.msk [vmem:[#allocation2 + $0x71] sm:$0x1] %vm1129_vm2, %v3186_v0  ;;  %2503 = vmatprep.mubr.msk.bf16.mxu0 %vm672_vm3, %v652_v16  ;;  %v644_v43 = vld [vmem:[%s3475_s2 + $0xe0] sm:$0xff]  ;;  %v645_v44 = vld [vmem:[%s3475_s2 + $0xe8] sm:$0xff]  ;;  %v661_v45 = vpack.c.bf16 %v643_v42, %v642_v41 }
  0xdc   : > { %1153 = vst.msk [vmem:[#allocation2 + $0x89] sm:$0x1] %vm1129_vm2, %v3186_v0  ;;  %1154 = vst.msk [vmem:[#allocation2 + $0xa1] sm:$0x1] %vm1129_vm2, %v3186_v0  ;;  %v662_v46 = vpack.c.bf16 %v645_v44, %v644_v43  ;;  %v646_v47 = vld [vmem:[%s3475_s2 + $0xf0] sm:$0xff]  ;;  %v647_v48 = vld [vmem:[%s3475_s2 + $0xf8] sm:$0xff] }
  0xdd   : > { %1155 = vst.msk [vmem:[#allocation2 + $0xb9] sm:$0x1] %vm1129_vm2, %v3186_v0  ;;  %1156 = vst.msk [vmem:[#allocation2 + $0xd1] sm:$0x1] %vm1129_vm2, %v3186_v0  ;;  %v663_v49 = vpack.c.bf16 %v647_v48, %v646_v47  ;;  %v3631_v50 = vld [vmem:[#allocation9] ss:$0 sm:$0xff] }
  0xde   : > { %1157 = vst.msk [vmem:[#allocation2 + $0xe9] sm:$0x1] %vm1129_vm2, %v3186_v0  ;;  %1158 = vst.msk [vmem:[#allocation2 + $0x101] sm:$0x1] %vm1129_vm2, %v3186_v0  ;;  %v3633_v52 = vld [vmem:[#allocation10] ss:$0 sm:$0xff] }
  0xdf   : > { %1159 = vst.msk [vmem:[#allocation2 + $0x119] sm:$0x1] %vm1129_vm2, %v3186_v0  ;;  %1160 = vst.msk [vmem:[#allocation2 + $0x131] sm:$0x1] %vm1129_vm2, %v3186_v0 }
  0xe0   : > { %1161 = vst.msk [vmem:[#allocation2 + $0x149] sm:$0x1] %vm1129_vm2, %v3186_v0  ;;  %1162 = vst.msk [vmem:[#allocation2 + $0x161] sm:$0x1] %vm1129_vm2, %v3186_v0 }
  0xe1   : > { %1163 = vst.msk [vmem:[#allocation2 + $0x179] sm:$0x1] %vm1129_vm2, %v3186_v0  ;;  %1164 = vst.msk [vmem:[#allocation2 + $0x191] sm:$0x1] %vm1129_vm2, %v3186_v0 }
  0xe2   : > { %1130 = vst.msk [vmem:[#allocation2] sm:$0x1] %vm1129_vm2, %v3186_v0  ;;  %1147 = vst.msk [vmem:[#allocation2 + $0x198] sm:$0x1] %vm1129_vm2, %v3186_v0  ;;  %2504 = vmatmul.mubr.msk.bf16.gmra.mxu0 %vm672_vm3, %v653_v21 }
  0xe3   : > { %1148 = vst.msk [vmem:[#allocation2 + $0x11] sm:$0x1] %vm1129_vm2, %v3186_v0  ;;  %1165 = vst.msk [vmem:[#allocation2 + $0x1a9] sm:$0x1] %vm1129_vm2, %v3186_v0  ;;  %2507 = vmatprep.mubr.msk.bf16.mxu0 %vm672_vm3, %v654_v22 }
  0xea   : > { %2508 = vmatmul.mubr.msk.bf16.gmra.mxu0 %vm672_vm3, %v655_v27 }
  0xeb   : > { %2511 = vmatprep.mubr.msk.bf16.mxu0 %vm672_vm3, %v656_v28 }
  0xf2   : > { %2512 = vmatmul.mubr.msk.bf16.gmra.mxu0 %vm672_vm3, %v657_v33 }
  0xf3   : > { %2515 = vmatprep.mubr.msk.bf16.mxu0 %vm672_vm3, %v658_v34 }
  0xfa   : > { %2516 = vmatmul.mubr.msk.bf16.gmra.mxu0 %vm672_vm3, %v659_v39 }
  0xfb   : > { %2519 = vmatprep.mubr.msk.bf16.mxu0 %vm672_vm3, %v660_v40 }
 0x102   : > { %2520 = vmatmul.mubr.msk.bf16.gmra.mxu0 %vm672_vm3, %v661_v45 }
 0x103   : > { %2523 = vmatprep.mubr.msk.bf16.mxu0 %vm672_vm3, %v662_v46 }
 0x10a   : > { %2524 = vmatmul.mubr.msk.bf16.gmra.mxu0 %vm672_vm3, %v663_v49 }
 0x192   : > { %v2497_v51 = vpop.f32.mrf.mxu0 }
 0x193   : > { %v891_v53 = vmul.f32 %v2497_v51, %v3631_v50 }
 0x194   : > { %v755_v54 = vpop.f32.mrf.mxu0 }
 0x195   : > { %v930_v55 = vadd.f32 %v3633_v52, %v891_v53  ;;  %v889_v56 = vmul.f32 %v3631_v50, %v755_v54 }
 0x196   : > { %v2498_v57 = vpop.f32.mrf.mxu0 }
 0x197   : > { %v962_v58 = vadd.f32 3.0, %v930_v55  ;;  %v928_v59 = vadd.f32 %v3633_v52, %v889_v56  ;;  %v892_v60 = vmul.f32 %v2498_v57, %v3631_v50 }
 0x198   : > { %v758_v61 = vpop.f32.mrf.mxu0 }
 0x199   : > { %v994_v62 = vmax.f32 %v962_v58, 0.0  ;;  %v960_v63 = vadd.f32 3.0, %v928_v59  ;;  %v931_v1 = vadd.f32 %v3633_v52, %v892_v60  ;;  %v890_v2 = vmul.f32 %v3631_v50, %v758_v61 }
 0x19a   : > { %v2501_v3 = vpop.f32.mrf.mxu0 }
 0x19b   : > { %v1026_v4 = vmin.f32 %v994_v62, 6.0  ;;  %v992_v5 = vmax.f32 %v960_v63, 0.0  ;;  %v963_v6 = vadd.f32 3.0, %v931_v1  ;;  %v929_v7 = vadd.f32 %v3633_v52, %v890_v2 }
 0x19c   : > { %v895_v8 = vmul.f32 %v2501_v3, %v3631_v50  ;;  %v771_v9 = vpop.f32.mrf.mxu0 }
 0x19d   : > { %v1058_v10 = vmul.f32 0.16666667, %v1026_v4  ;;  %v1024_v11 = vmin.f32 %v992_v5, 6.0  ;;  %v995_v12 = vmax.f32 %v963_v6, 0.0  ;;  %v961_v13 = vadd.f32 3.0, %v929_v7 }
 0x19e   : > { %v934_v14 = vadd.f32 %v3633_v52, %v895_v8  ;;  %v893_v15 = vmul.f32 %v3631_v50, %v771_v9  ;;  %v2502_v16 = vpop.f32.mrf.mxu0 }
 0x19f   : > { %v1090_v17 = vmul.f32 %v1058_v10, %v930_v55  ;;  %v1056_v18 = vmul.f32 0.16666667, %v1024_v11  ;;  %v1027_v19 = vmin.f32 %v995_v12, 6.0  ;;  %v993_v20 = vmax.f32 %v961_v13, 0.0 }
 0x1a0   : > { %v966_v21 = vadd.f32 3.0, %v934_v14  ;;  %v932_v22 = vadd.f32 %v3633_v52, %v893_v15  ;;  %v896_v23 = vmul.f32 %v2502_v16, %v3631_v50  ;;  %v774_v24 = vpop.f32.mrf.mxu0 }
 0x1a1   : > { %1169 = vst.msk [vmem:[#allocation2 + $0x31] sm:$0xff] %vm1120_vm0, %v1090_v17  ;;  %v1088_v25 = vmul.f32 %v1056_v18, %v928_v59  ;;  %v1059_v26 = vmul.f32 0.16666667, %v1027_v19  ;;  %v1025_v27 = vmin.f32 %v993_v20, 6.0  ;;  %v894_v28 = vmul.f32 %v3631_v50, %v774_v24 }
 0x1a2   : > { %v998_v29 = vmax.f32 %v966_v21, 0.0  ;;  %v964_v30 = vadd.f32 3.0, %v932_v22  ;;  %v935_v31 = vadd.f32 %v3633_v52, %v896_v23  ;;  %v2505_v32 = vpop.f32.mrf.mxu0 }
 0x1a3   : > { %1167 = vst.msk [vmem:[#allocation2 + $0x19] sm:$0xff] %vm1120_vm0, %v1088_v25  ;;  %v1091_v33 = vmul.f32 %v1059_v26, %v931_v1  ;;  %v1057_v34 = vmul.f32 0.16666667, %v1025_v27  ;;  %v933_v35 = vadd.f32 %v3633_v52, %v894_v28  ;;  %v899_v36 = vmul.f32 %v2505_v32, %v3631_v50 }
 0x1a4   : > { %v1030_v37 = vmin.f32 %v998_v29, 6.0  ;;  %v996_v38 = vmax.f32 %v964_v30, 0.0  ;;  %v967_v39 = vadd.f32 3.0, %v935_v31  ;;  %v787_v40 = vpop.f32.mrf.mxu0 }
 0x1a5   : > { %1170 = vst.msk [vmem:[#allocation2 + $0x39] sm:$0xff] %vm1120_vm0, %v1091_v33  ;;  %v1089_v41 = vmul.f32 %v1057_v34, %v929_v7  ;;  %v965_v42 = vadd.f32 3.0, %v933_v35  ;;  %v938_v43 = vadd.f32 %v3633_v52, %v899_v36  ;;  %v897_v44 = vmul.f32 %v3631_v50, %v787_v40 }
 0x1a6   : > { %v1062_v45 = vmul.f32 0.16666667, %v1030_v37  ;;  %v1028_v46 = vmin.f32 %v996_v38, 6.0  ;;  %v999_v47 = vmax.f32 %v967_v39, 0.0  ;;  %v2506_v48 = vpop.f32.mrf.mxu0 }
 0x1a7   : > { %1168 = vst.msk [vmem:[#allocation2 + $0x21] sm:$0xff] %vm1120_vm0, %v1089_v41  ;;  %v997_v49 = vmax.f32 %v965_v42, 0.0  ;;  %v970_v51 = vadd.f32 3.0, %v938_v43  ;;  %v936_v53 = vadd.f32 %v3633_v52, %v897_v44  ;;  %v900_v54 = vmul.f32 %v2506_v48, %v3631_v50 }
 0x1a8   : > { %v1094_v55 = vmul.f32 %v1062_v45, %v934_v14  ;;  %v1060_v56 = vmul.f32 0.16666667, %v1028_v46  ;;  %v1031_v57 = vmin.f32 %v999_v47, 6.0  ;;  %v790_v58 = vpop.f32.mrf.mxu0 }
 0x1a9   : > { %v1029_v59 = vmin.f32 %v997_v49, 6.0  ;;  %v1002_v60 = vmax.f32 %v970_v51, 0.0  ;;  %v968_v61 = vadd.f32 3.0, %v936_v53  ;;  %v939_v62 = vadd.f32 %v3633_v52, %v900_v54 }
 0x1aa   : > { %1173 = vst.msk [vmem:[#allocation2 + $0x61] sm:$0xff] %vm1120_vm0, %v1094_v55  ;;  %v1092_v63 = vmul.f32 %v1060_v56, %v932_v22  ;;  %v1063_v1 = vmul.f32 0.16666667, %v1031_v57  ;;  %v898_v2 = vmul.f32 %v3631_v50, %v790_v58  ;;  %v2509_v3 = vpop.f32.mrf.mxu0 }
 0x1ab   : > { %v1061_v4 = vmul.f32 0.16666667, %v1029_v59  ;;  %v1034_v5 = vmin.f32 %v1002_v60, 6.0  ;;  %v1000_v6 = vmax.f32 %v968_v61, 0.0  ;;  %v971_v7 = vadd.f32 3.0, %v939_v62 }
 0x1ac   : > { %1171 = vst.msk [vmem:[#allocation2 + $0x49] sm:$0xff] %vm1120_vm0, %v1092_v63  ;;  %v1095_v8 = vmul.f32 %v1063_v1, %v935_v31  ;;  %v937_v9 = vadd.f32 %v3633_v52, %v898_v2  ;;  %v903_v10 = vmul.f32 %v2509_v3, %v3631_v50  ;;  %v803_v11 = vpop.f32.mrf.mxu0 }
 0x1ad   : > { %v1093_v12 = vmul.f32 %v1061_v4, %v933_v35  ;;  %v1066_v13 = vmul.f32 0.16666667, %v1034_v5  ;;  %v1032_v14 = vmin.f32 %v1000_v6, 6.0  ;;  %v1003_v15 = vmax.f32 %v971_v7, 0.0 }
 0x1ae   : > { %1174 = vst.msk [vmem:[#allocation2 + $0x69] sm:$0xff] %vm1120_vm0, %v1095_v8  ;;  %v969_v16 = vadd.f32 3.0, %v937_v9  ;;  %v942_v17 = vadd.f32 %v3633_v52, %v903_v10  ;;  %v901_v18 = vmul.f32 %v3631_v50, %v803_v11  ;;  %v2510_v19 = vpop.f32.mrf.mxu0 }
 0x1af   : > { %1172 = vst.msk [vmem:[#allocation2 + $0x51] sm:$0xff] %vm1120_vm0, %v1093_v12  ;;  %v1098_v20 = vmul.f32 %v1066_v13, %v938_v43  ;;  %v1064_v21 = vmul.f32 0.16666667, %v1032_v14  ;;  %v1035_v22 = vmin.f32 %v1003_v15, 6.0  ;;  %v904_v23 = vmul.f32 %v2510_v19, %v3631_v50 }
 0x1b0   : > { %v1001_v24 = vmax.f32 %v969_v16, 0.0  ;;  %v974_v25 = vadd.f32 3.0, %v942_v17  ;;  %v940_v26 = vadd.f32 %v3633_v52, %v901_v18  ;;  %v806_v27 = vpop.f32.mrf.mxu0 }
 0x1b1   : > { %1177 = vst.msk [vmem:[#allocation2 + $0x91] sm:$0xff] %vm1120_vm0, %v1098_v20  ;;  %v1096_v28 = vmul.f32 %v1064_v21, %v936_v53  ;;  %v1067_v29 = vmul.f32 0.16666667, %v1035_v22  ;;  %v943_v30 = vadd.f32 %v3633_v52, %v904_v23  ;;  %v902_v31 = vmul.f32 %v3631_v50, %v806_v27 }
 0x1b2   : > { %v1033_v32 = vmin.f32 %v1001_v24, 6.0  ;;  %v1006_v33 = vmax.f32 %v974_v25, 0.0  ;;  %v972_v34 = vadd.f32 3.0, %v940_v26  ;;  %v2513_v35 = vpop.f32.mrf.mxu0 }
 0x1b3   : > { %1175 = vst.msk [vmem:[#allocation2 + $0x79] sm:$0xff] %vm1120_vm0, %v1096_v28  ;;  %v1099_v36 = vmul.f32 %v1067_v29, %v939_v62  ;;  %v975_v37 = vadd.f32 3.0, %v943_v30  ;;  %v941_v38 = vadd.f32 %v3633_v52, %v902_v31  ;;  %v907_v39 = vmul.f32 %v2513_v35, %v3631_v50 }
 0x1b4   : > { %v1065_v40 = vmul.f32 0.16666667, %v1033_v32  ;;  %v1038_v41 = vmin.f32 %v1006_v33, 6.0  ;;  %v1004_v42 = vmax.f32 %v972_v34, 0.0  ;;  %v819_v43 = vpop.f32.mrf.mxu0 }
 0x1b5   : > { %1178 = vst.msk [vmem:[#allocation2 + $0x99] sm:$0xff] %vm1120_vm0, %v1099_v36  ;;  %v1007_v44 = vmax.f32 %v975_v37, 0.0  ;;  %v973_v45 = vadd.f32 3.0, %v941_v38  ;;  %v946_v46 = vadd.f32 %v3633_v52, %v907_v39  ;;  %v905_v47 = vmul.f32 %v3631_v50, %v819_v43 }
 0x1b6   : > { %v1097_v48 = vmul.f32 %v1065_v40, %v937_v9  ;;  %v1070_v49 = vmul.f32 0.16666667, %v1038_v41  ;;  %v1036_v51 = vmin.f32 %v1004_v42, 6.0  ;;  %v2514_v53 = vpop.f32.mrf.mxu0 }
 0x1b7   : > { %v1039_v54 = vmin.f32 %v1007_v44, 6.0  ;;  %v1005_v55 = vmax.f32 %v973_v45, 0.0  ;;  %v978_v56 = vadd.f32 3.0, %v946_v46  ;;  %v944_v57 = vadd.f32 %v3633_v52, %v905_v47 }
 0x1b8   : > { %1176 = vst.msk [vmem:[#allocation2 + $0x81] sm:$0xff] %vm1120_vm0, %v1097_v48  ;;  %v1102_v58 = vmul.f32 %v1070_v49, %v942_v17  ;;  %v1068_v59 = vmul.f32 0.16666667, %v1036_v51  ;;  %v908_v60 = vmul.f32 %v2514_v53, %v3631_v50  ;;  %v822_v61 = vpop.f32.mrf.mxu0 }
 0x1b9   : > { %v1071_v62 = vmul.f32 0.16666667, %v1039_v54  ;;  %v1037_v63 = vmin.f32 %v1005_v55, 6.0  ;;  %v1010_v1 = vmax.f32 %v978_v56, 0.0  ;;  %v976_v2 = vadd.f32 3.0, %v944_v57 }
 0x1ba   : > { %1181 = vst.msk [vmem:[#allocation2 + $0xc1] sm:$0xff] %vm1120_vm0, %v1102_v58  ;;  %v1100_v3 = vmul.f32 %v1068_v59, %v940_v26  ;;  %v947_v4 = vadd.f32 %v3633_v52, %v908_v60  ;;  %v906_v5 = vmul.f32 %v3631_v50, %v822_v61  ;;  %v2517_v6 = vpop.f32.mrf.mxu0 }
 0x1bb   : > { %v1103_v7 = vmul.f32 %v1071_v62, %v943_v30  ;;  %v1069_v8 = vmul.f32 0.16666667, %v1037_v63  ;;  %v1042_v9 = vmin.f32 %v1010_v1, 6.0  ;;  %v1008_v10 = vmax.f32 %v976_v2, 0.0 }
 0x1bc   : > { %1179 = vst.msk [vmem:[#allocation2 + $0xa9] sm:$0xff] %vm1120_vm0, %v1100_v3  ;;  %v979_v11 = vadd.f32 3.0, %v947_v4  ;;  %v945_v12 = vadd.f32 %v3633_v52, %v906_v5  ;;  %v911_v13 = vmul.f32 %v2517_v6, %v3631_v50  ;;  %v835_v14 = vpop.f32.mrf.mxu0 }
 0x1bd   : > { %1182 = vst.msk [vmem:[#allocation2 + $0xc9] sm:$0xff] %vm1120_vm0, %v1103_v7  ;;  %v1101_v15 = vmul.f32 %v1069_v8, %v941_v38  ;;  %v1074_v16 = vmul.f32 0.16666667, %v1042_v9  ;;  %v1040_v17 = vmin.f32 %v1008_v10, 6.0  ;;  %v909_v18 = vmul.f32 %v3631_v50, %v835_v14 }
 0x1be   : > { %v1011_v19 = vmax.f32 %v979_v11, 0.0  ;;  %v977_v20 = vadd.f32 3.0, %v945_v12  ;;  %v950_v21 = vadd.f32 %v3633_v52, %v911_v13  ;;  %v2518_v22 = vpop.f32.mrf.mxu0 }
 0x1bf   : > { %1180 = vst.msk [vmem:[#allocation2 + $0xb1] sm:$0xff] %vm1120_vm0, %v1101_v15  ;;  %v1106_v23 = vmul.f32 %v1074_v16, %v946_v46  ;;  %v1072_v24 = vmul.f32 0.16666667, %v1040_v17  ;;  %v948_v25 = vadd.f32 %v3633_v52, %v909_v18  ;;  %v912_v26 = vmul.f32 %v2518_v22, %v3631_v50 }
 0x1c0   : > { %v1043_v27 = vmin.f32 %v1011_v19, 6.0  ;;  %v1009_v28 = vmax.f32 %v977_v20, 0.0  ;;  %v982_v29 = vadd.f32 3.0, %v950_v21  ;;  %v838_v30 = vpop.f32.mrf.mxu0 }
 0x1c1   : > { %1185 = vst.msk [vmem:[#allocation2 + $0xf1] sm:$0xff] %vm1120_vm0, %v1106_v23  ;;  %v1104_v31 = vmul.f32 %v1072_v24, %v944_v57  ;;  %v980_v32 = vadd.f32 3.0, %v948_v25  ;;  %v951_v33 = vadd.f32 %v3633_v52, %v912_v26  ;;  %v910_v34 = vmul.f32 %v3631_v50, %v838_v30 }
 0x1c2   : > { %v1075_v35 = vmul.f32 0.16666667, %v1043_v27  ;;  %v1041_v36 = vmin.f32 %v1009_v28, 6.0  ;;  %v1014_v37 = vmax.f32 %v982_v29, 0.0  ;;  %v2521_v38 = vpop.f32.mrf.mxu0 }
 0x1c3   : > { %1183 = vst.msk [vmem:[#allocation2 + $0xd9] sm:$0xff] %vm1120_vm0, %v1104_v31  ;;  %v1012_v39 = vmax.f32 %v980_v32, 0.0  ;;  %v983_v40 = vadd.f32 3.0, %v951_v33  ;;  %v949_v41 = vadd.f32 %v3633_v52, %v910_v34  ;;  %v915_v42 = vmul.f32 %v2521_v38, %v3631_v50 }
 0x1c4   : > { %v1107_v43 = vmul.f32 %v1075_v35, %v947_v4  ;;  %v1073_v44 = vmul.f32 0.16666667, %v1041_v36  ;;  %v1046_v45 = vmin.f32 %v1014_v37, 6.0  ;;  %v851_v46 = vpop.f32.mrf.mxu0 }
 0x1c5   : > { %v1044_v47 = vmin.f32 %v1012_v39, 6.0  ;;  %v1015_v48 = vmax.f32 %v983_v40, 0.0  ;;  %v981_v49 = vadd.f32 3.0, %v949_v41  ;;  %v954_v51 = vadd.f32 %v3633_v52, %v915_v42 }
 0x1c6   : > { %1186 = vst.msk [vmem:[#allocation2 + $0xf9] sm:$0xff] %vm1120_vm0, %v1107_v43  ;;  %v1105_v53 = vmul.f32 %v1073_v44, %v945_v12  ;;  %v1078_v54 = vmul.f32 0.16666667, %v1046_v45  ;;  %v913_v55 = vmul.f32 %v3631_v50, %v851_v46  ;;  %v2522_v56 = vpop.f32.mrf.mxu0 }
 0x1c7   : > { %v1076_v57 = vmul.f32 0.16666667, %v1044_v47  ;;  %v1047_v58 = vmin.f32 %v1015_v48, 6.0  ;;  %v1013_v59 = vmax.f32 %v981_v49, 0.0  ;;  %v986_v60 = vadd.f32 3.0, %v954_v51 }
 0x1c8   : > { %1184 = vst.msk [vmem:[#allocation2 + $0xe1] sm:$0xff] %vm1120_vm0, %v1105_v53  ;;  %v1110_v61 = vmul.f32 %v1078_v54, %v950_v21  ;;  %v952_v62 = vadd.f32 %v3633_v52, %v913_v55  ;;  %v916_v63 = vmul.f32 %v2522_v56, %v3631_v50  ;;  %v854_v1 = vpop.f32.mrf.mxu0 }
 0x1c9   : > { %v1108_v2 = vmul.f32 %v1076_v57, %v948_v25  ;;  %v1079_v3 = vmul.f32 0.16666667, %v1047_v58  ;;  %v1045_v4 = vmin.f32 %v1013_v59, 6.0  ;;  %v1018_v5 = vmax.f32 %v986_v60, 0.0 }
 0x1ca   : > { %1189 = vst.msk [vmem:[#allocation2 + $0x121] sm:$0xff] %vm1120_vm0, %v1110_v61  ;;  %v984_v6 = vadd.f32 3.0, %v952_v62  ;;  %v955_v7 = vadd.f32 %v3633_v52, %v916_v63  ;;  %v914_v8 = vmul.f32 %v3631_v50, %v854_v1  ;;  %v2525_v9 = vpop.f32.mrf.mxu0 }
 0x1cb   : > { %1187 = vst.msk [vmem:[#allocation2 + $0x109] sm:$0xff] %vm1120_vm0, %v1108_v2  ;;  %v1111_v10 = vmul.f32 %v1079_v3, %v951_v33  ;;  %v1077_v11 = vmul.f32 0.16666667, %v1045_v4  ;;  %v1050_v12 = vmin.f32 %v1018_v5, 6.0  ;;  %v919_v13 = vmul.f32 %v2525_v9, %v3631_v50 }
 0x1cc   : > { %v1016_v14 = vmax.f32 %v984_v6, 0.0  ;;  %v987_v15 = vadd.f32 3.0, %v955_v7  ;;  %v953_v16 = vadd.f32 %v3633_v52, %v914_v8  ;;  %v867_v17 = vpop.f32.mrf.mxu0 }
 0x1cd   : > { %1190 = vst.msk [vmem:[#allocation2 + $0x129] sm:$0xff] %vm1120_vm0, %v1111_v10  ;;  %v1109_v18 = vmul.f32 %v1077_v11, %v949_v41  ;;  %v1082_v19 = vmul.f32 0.16666667, %v1050_v12  ;;  %v958_v20 = vadd.f32 %v3633_v52, %v919_v13  ;;  %v917_v21 = vmul.f32 %v3631_v50, %v867_v17 }
 0x1ce   : > { %v1048_v22 = vmin.f32 %v1016_v14, 6.0  ;;  %v1019_v23 = vmax.f32 %v987_v15, 0.0  ;;  %v985_v24 = vadd.f32 3.0, %v953_v16  ;;  %v2526_v25 = vpop.f32.mrf.mxu0 }
 0x1cf   : > { %1188 = vst.msk [vmem:[#allocation2 + $0x111] sm:$0xff] %vm1120_vm0, %v1109_v18  ;;  %v1114_v26 = vmul.f32 %v1082_v19, %v954_v51  ;;  %v990_v27 = vadd.f32 3.0, %v958_v20  ;;  %v956_v28 = vadd.f32 %v3633_v52, %v917_v21  ;;  %v920_v29 = vmul.f32 %v2526_v25, %v3631_v50 }
 0x1d0   : > { %v1080_v30 = vmul.f32 0.16666667, %v1048_v22  ;;  %v1051_v31 = vmin.f32 %v1019_v23, 6.0  ;;  %v1017_v32 = vmax.f32 %v985_v24, 0.0  ;;  %v870_v33 = vpop.f32.mrf.mxu0 }
 0x1d1   : > { %1193 = vst.msk [vmem:[#allocation2 + $0x151] sm:$0xff] %vm1120_vm0, %v1114_v26  ;;  %v1022_v34 = vmax.f32 %v990_v27, 0.0  ;;  %v988_v35 = vadd.f32 3.0, %v956_v28  ;;  %v959_v36 = vadd.f32 %v3633_v52, %v920_v29  ;;  %v918_v37 = vmul.f32 %v3631_v50, %v870_v33 }
 0x1d2   : > { %v1112_v38 = vmul.f32 %v1080_v30, %v952_v62  ;;  %v1083_v39 = vmul.f32 0.16666667, %v1051_v31  ;;  %v1049_v40 = vmin.f32 %v1017_v32, 6.0  ;;  %v3735_v62 = vmov 0.0  }
 0x1d3   : > { %v1054_v41 = vmin.f32 %v1022_v34, 6.0  ;;  %v1020_v42 = vmax.f32 %v988_v35, 0.0  ;;  %v991_v43 = vadd.f32 3.0, %v959_v36  ;;  %v957_v44 = vadd.f32 %v3633_v52, %v918_v37 }
 0x1d4   : > { %1191 = vst.msk [vmem:[#allocation2 + $0x139] sm:$0xff] %vm1120_vm0, %v1112_v38  ;;  %v1115_v45 = vmul.f32 %v1083_v39, %v955_v7  ;;  %v1081_v46 = vmul.f32 0.16666667, %v1049_v40 }
 0x1d5   : > { %v1086_v47 = vmul.f32 0.16666667, %v1054_v41  ;;  %v1052_v48 = vmin.f32 %v1020_v42, 6.0  ;;  %v1023_v49 = vmax.f32 %v991_v43, 0.0  ;;  %v989_v51 = vadd.f32 3.0, %v957_v44 }
 0x1d6   : > { %1194 = vst.msk [vmem:[#allocation2 + $0x159] sm:$0xff] %vm1120_vm0, %v1115_v45  ;;  %v1113_v53 = vmul.f32 %v1081_v46, %v953_v16 }
 0x1d7   : > { %v1118_v50 = vmul.f32 %v1086_v47, %v958_v20  ;;  %v1084_v54 = vmul.f32 0.16666667, %v1052_v48  ;;  %v1055_v55 = vmin.f32 %v1023_v49, 6.0  ;;  %v1021_v56 = vmax.f32 %v989_v51, 0.0 }
 0x1d8   : > { %1192 = vst.msk [vmem:[#allocation2 + $0x141] sm:$0xff] %vm1120_vm0, %v1113_v53 }
 0x1d9   : > { %1197 = vst.msk [vmem:[#allocation2 + $0x181] sm:$0xff] %vm1120_vm0, %v1118_v50  ;;  %v1116_v52 = vmul.f32 %v1084_v54, %v956_v28  ;;  %v1087_v57 = vmul.f32 0.16666667, %v1055_v55  ;;  %v1053_v58 = vmin.f32 %v1021_v56, 6.0 }
 0x1db   : > { %1195 = vst.msk [vmem:[#allocation2 + $0x169] sm:$0xff] %vm1120_vm0, %v1116_v52  ;;  %v1119_v59 = vmul.f32 %v1087_v57, %v959_v36  ;;  %v1085_v60 = vmul.f32 0.16666667, %v1053_v58 }
 0x1dd   : > { %1198 = vst.msk [vmem:[#allocation2 + $0x189] sm:$0xff] %vm1120_vm0, %v1119_v59  ;;  %v1117_v61 = vmul.f32 %v1085_v60, %v957_v44 }
 0x1df   : > { %1196 = vst.msk [vmem:[#allocation2 + $0x171] sm:$0xff] %vm1120_vm0, %v1117_v61 }
 0x1e0 LB: >> { %s1206_s20 = smul.u32 24, %s3169_s3  ;;  %v2354_v63 = vld [vmem:[%s4128_s4] ss:$0 sm:$0xff]  ;;  %v2355_v1 = vld [vmem:[%s4128_s4 + $0x1] ss:$0 sm:$0xff]  ;;  %vm1352_vm4 = vcmask 519168   ;;  %s3169_s3 = sphi %s3737_s3, %s1204_s3   ;;  %v3165_v62 = vphi %v3735_v62, %v4184_v62  }
 0x1e1   : >> { %v2356_v2 = vld [vmem:[%s4128_s4 + $0x2] ss:$0 sm:$0xff]  ;;  %v2360_v3 = vld [vmem:[%s4128_s4 + $0x4] ss:$0 sm:$0xff]  ;;  %v2364_v12 = vld [vmem:[%s4128_s4 + $0x5] ss:$0 sm:$0xff] }
 0x1e2   : >> { %s3758_s6 = scalar_lea.vmem [#allocation2], %s1206_s20  ;;  %v2368_v19 = vld [vmem:[%s4128_s4 + $0x6] ss:$0 sm:$0xff]  ;;  %v2372_v28 = vld [vmem:[%s4128_s4 + $0x8] ss:$0 sm:$0xff] }
 0x1e3   : >> { %v2376_v35 = vld [vmem:[%s4128_s4 + $0x9] ss:$0 sm:$0xff]  ;;  %v2380_v42 = vld [vmem:[%s4128_s4 + $0xa] ss:$0 sm:$0xff]  ;;  %v2381_v52 = vld [vmem:[#allocation12] ss:$0 sm:$0xff] }
 0x1e4   : >> { %v2382_v60 = vld [vmem:[#allocation13] ss:$0 sm:$0xff] }
 0x1e6   : >> { %v1208_v4 = vld [vmem:[%s3758_s6] sm:$0xff]  ;;  %v2357_v10 = vld [vmem:[%s3758_s6 + $0x18] sm:$0xff]  ;;  %v1209_v15 = vld [vmem:[%s3758_s6 + $0x8] sm:$0xff] }
 0x1e7   : >> { %v1217_v5 = vld [vmem:[%s3758_s6 + $0x1] sm:$0xff]  ;;  %v1215_v7 = vmul.f32 %v2354_v63, %v1208_v4  ;;  %v2361_v11 = vld [vmem:[%s3758_s6 + $0x19] sm:$0xff]  ;;  %v1250_v14 = vmul.f32 %v2360_v3, %v2357_v10  ;;  %v1218_v16 = vld [vmem:[%s3758_s6 + $0x9] sm:$0xff]  ;;  %v1216_v20 = vmul.f32 %v2354_v63, %v1209_v15 }
 0x1e8   : >> { %v1228_v6 = vld [vmem:[%s3758_s6 + $0x2] sm:$0xff]  ;;  %v1224_v8 = vmul.f32 %v2355_v1, %v1217_v5  ;;  %v1229_v17 = vld [vmem:[%s3758_s6 + $0xa] sm:$0xff]  ;;  %v2365_v18 = vld [vmem:[%s3758_s6 + $0x1a] sm:$0xff]  ;;  %v1225_v21 = vmul.f32 %v2355_v1, %v1218_v16  ;;  %v1261_v25 = vmul.f32 %v2364_v12, %v2361_v11 }
 0x1e9   : >> { %v1235_v9 = vmul.f32 %v2356_v2, %v1228_v6  ;;  %v1236_v22 = vmul.f32 %v2356_v2, %v1229_v17  ;;  %v2358_v23 = vld [vmem:[%s3758_s6 + $0x20] sm:$0xff]  ;;  %v2369_v27 = vld [vmem:[%s3758_s6 + $0x30] sm:$0xff]  ;;  %v1272_v32 = vmul.f32 %v2368_v19, %v2365_v18  ;;  %v2370_v40 = vld [vmem:[%s3758_s6 + $0x38] sm:$0xff] }
 0x1ea   : >> { %v1226_v13 = vadd.f32 %v1224_v8, %v1215_v7  ;;  %v2362_v26 = vld [vmem:[%s3758_s6 + $0x21] sm:$0xff]  ;;  %v1227_v29 = vadd.f32 %v1225_v21, %v1216_v20  ;;  %v1251_v30 = vmul.f32 %v2360_v3, %v2358_v23  ;;  %v2373_v34 = vld [vmem:[%s3758_s6 + $0x31] sm:$0xff]  ;;  %v1287_v39 = vmul.f32 %v2372_v28, %v2369_v27  ;;  %v2374_v47 = vld [vmem:[%s3758_s6 + $0x39] sm:$0xff] }
 0x1eb   : >> { %v2366_v33 = vld [vmem:[%s3758_s6 + $0x22] sm:$0xff]  ;;  %v1262_v37 = vmul.f32 %v2364_v12, %v2362_v26  ;;  %v2377_v41 = vld [vmem:[%s3758_s6 + $0x32] sm:$0xff]  ;;  %v1298_v46 = vmul.f32 %v2376_v35, %v2373_v34  ;;  %v1288_v49 = vmul.f32 %v2372_v28, %v2370_v40  ;;  %v2378_v50 = vld [vmem:[%s3758_s6 + $0x3a] sm:$0xff]  ;;  %v1299_v55 = vmul.f32 %v2376_v35, %v2374_v47  ;;  %s2436_s6 = sshll.u32 %s3169_s3, 3  ;;  %s1204_s3 = sadd.s32 1, %s3169_s3  }
 0x1ec   : >> { %v1237_v24 = vadd.f32 %v1235_v9, %v1226_v13  ;;  %v1238_v36 = vadd.f32 %v1236_v22, %v1227_v29  ;;  %v1273_v44 = vmul.f32 %v2368_v19, %v2366_v33  ;;  %v1309_v53 = vmul.f32 %v2380_v42, %v2377_v41  ;;  %s1351_s18 = scalar_lea.vmem [#allocation3], %s2436_s6  ;;  %p1201_p1 = scmp.ge.s32.totalorder %s1204_s3, 16  }
 0x1ed   : >> { %v1310_v58 = vmul.f32 %v2380_v42, %v2378_v50  ;;  %2527 = vmatprep.subr.mxu0 (%p1201_p1), %v3186_v0  ;;  %s4185_s14 = sld [smem:[#allocation35_spill]] (%p1201_p1)  ;;  %vm3187_vm5 = vmmov (%p1201_p1), 0   ;;  %v1488_v35 = vld [vmem:[#allocation16 + $0x38] sm:$0xff] (%p1201_p1)  ;;  %v1483_v40 = vld [vmem:[#allocation16 + $0x10] sm:$0xff] (%p1201_p1)  ;;  %v1482_v41 = vld [vmem:[#allocation16 + $0x8] sm:$0xff] (%p1201_p1)  ;;  %s2437_s25 = sshll.u32 (%p1201_p1), %s3287_s19, 12 }
 0x1ee   : >> { %v1252_v31 = vadd.f32 %v1250_v14, %v1237_v24  ;;  %v1253_v43 = vadd.f32 %v1251_v30, %v1238_v36  ;;  %2543 = vmatprep.mubr.msk.f32.mxu0 (%p1201_p1), %vm3187_vm5, %v3186_v0  ;;  %v1487_v36 = vld [vmem:[#allocation16 + $0x30] sm:$0xff] (%p1201_p1)  ;;  %v1481_v42 = vld [vmem:[#allocation16] sm:$0xff] (%p1201_p1)  ;;  %s4186_s5 = sld [smem:[#allocation36_spill]] (%p1201_p1)  ;;  %s2120_s22 = sshll.u32 (%p1201_p1), %s3733_s1, 4  ;;  %s4077_s22 = int_to_ptr.vmem [resolvable:$true] %s2120_s22 }
 0x1ef   : > { %s4187_s11 = sld [smem:[#allocation37_spill]] (%p1201_p1)  ;;  %s2107_s19 = scalar_lea.sflag (%p1201_p1), [#allocation6], %s3469_s28 }
 0x1f0   : >> { %v1263_v38 = vadd.f32 %v1261_v25, %v1252_v31  ;;  %v1264_v48 = vadd.f32 %v1262_v37, %v1253_v43  ;;  %v1486_v37 = vld [vmem:[#allocation16 + $0x28] sm:$0xff] (%p1201_p1)  ;;  %v1406_v43 = vld [vmem:[#allocation15] sm:$0x1] (%p1201_p1)  ;;  %p4188_p7 = scmp.ne.s32.totalorder (%p1201_p1), %s4167_s21, 0 }
 0x1f2   : >> { %v1274_v45 = vadd.f32 %v1272_v32, %v1263_v38  ;;  %v1275_v54 = vadd.f32 %v1273_v44, %v1264_v48  ;;  %v1485_v38 = vld [vmem:[#allocation16 + $0x20] sm:$0xff] (%p1201_p1) }
 0x1f3   : > { %v1405_v27 = vld [vmem:[%s4185_s14 + $0x38] sm:$0xff] (%p1201_p1)  ;;  %v1404_v28 = vld [vmem:[%s4185_s14 + $0x30] sm:$0xff] (%p1201_p1)  ;;  %v1402_v29 = vld [vmem:[%s4185_s14 + $0x20] sm:$0xff] (%p1201_p1) }
 0x1f4   : >> { %v1289_v51 = vadd.f32 %v1287_v39, %v1274_v45  ;;  %v1290_v57 = vadd.f32 %v1288_v49, %v1275_v54  ;;  %2528 = vmatpush3.msra.mxu0 (%p1201_p1), %v1405_v27  ;;  %v1401_v30 = vld [vmem:[%s4185_s14 + $0x18] sm:$0xff] (%p1201_p1)  ;;  %v1400_v31 = vld [vmem:[%s4185_s14 + $0x10] sm:$0xff] (%p1201_p1)  ;;  %v1399_v32 = vld [vmem:[%s4185_s14 + $0x8] sm:$0xff] (%p1201_p1) }
 0x1f5   : > { %2529 = vmatprep.subr.mxu0 (%p1201_p1), %v3186_v0  ;;  %v1398_v33 = vld [vmem:[%s4185_s14] sm:$0xff] (%p1201_p1)  ;;  %v2777_v48 = vld [vmem:[%s4186_s5 + $0x18] sm:$0xff] (%p1201_p1)   ;;  %v2778_v49 = vld [vmem:[%s4186_s5 + $0x10] sm:$0xff] (%p1201_p1)   ;;  %s4075_s6 = scalar_lea.hbm (%p1201_p1), %s4187_s11, %s2437_s25 }
 0x1f6   : >> { %v1300_v56 = vadd.f32 %v1298_v46, %v1289_v51  ;;  %v1301_v61 = vadd.f32 %v1299_v55, %v1290_v57  ;;  %2530 = vmatpush3.msra.mxu0 (%p1201_p1), %v1404_v28  ;;  %v1484_v39 = vld [vmem:[#allocation16 + $0x18] sm:$0xff] (%p1201_p1)  ;;  %2565 = vmatprep.subr.bf16.mxu1 (%p1201_p1), %v2777_v48 }
 0x1f7   : > { %2531 = vmatprep.subr.mxu0 (%p1201_p1), %v3186_v0  ;;  %2566 = vmatpush3.bf16.msra.mxu1 (%p1201_p1), %v2777_v48  ;;  %v2780_v51 = vld [vmem:[%s4186_s5] sm:$0xff] (%p1201_p1)  }
 0x1f8   : >> { %v1311_v59 = vadd.f32 %v1309_v53, %v1300_v56  ;;  %v1312_v1 = vadd.f32 %v1310_v58, %v1301_v61  ;;  %2567 = vmatprep.subr.bf16.mxu1 (%p1201_p1), %v2778_v49  ;;  %v1489_v53 = vld [vmem:[#allocation18] sm:$0x1] (%p1201_p1) }
 0x1fa   : >> { %v1320_v63 = vmul.f32 %v2381_v52, %v1311_v59  ;;  %v1321_v3 = vmul.f32 %v2381_v52, %v1312_v1  ;;  %v1571_v52 = vlaneseq (%p1201_p1) }
 0x1fb   : > { %2568 = vmatpush3.bf16.msra.mxu1 (%p1201_p1), %v2778_v49 }
 0x1fc   : >> { %v1329_v2 = vadd.f32 %v2382_v60, %v1320_v63  ;;  %v1330_v5 = vadd.f32 %v2382_v60, %v1321_v3  ;;  %v1572_v59 = vshrl.u32 (%p1201_p1), %v1571_v52, 7 }
 0x1fe   : >> { %v1331_v4 = vadd.f32 3.0, %v1329_v2  ;;  %v1332_v7 = vadd.f32 3.0, %v1330_v5  ;;  %v1573_v63 = vsub.s32 (%p1201_p1), 0, %v1572_v59 }
 0x200   : >> { %v1333_v6 = vmax.f32 %v1331_v4, 0.0  ;;  %v1334_v9 = vmax.f32 %v1332_v7, 0.0 }
 0x202   : >> { %v1335_v8 = vmin.f32 %v1333_v6, 6.0  ;;  %v1336_v11 = vmin.f32 %v1334_v9, 6.0 }
 0x204   : >> { %v1337_v10 = vmul.f32 0.16666667, %v1335_v8  ;;  %v1338_v13 = vmul.f32 0.16666667, %v1336_v11 }
 0x206   : >> { %v1339_v12 = vmul.f32 %v1337_v10, %v1329_v2  ;;  %v1340_v16 = vmul.f32 %v1338_v13, %v1330_v5 }
 0x208   : >> { %v2434_v14 = vpack.c.bf16 %v1339_v12, %v1339_v12  ;;  %v1355_v15 = vsel %vm1120_vm0, %v1339_v12, 0.0  ;;  %v2435_v17 = vpack.c.bf16 %v1340_v16, %v1340_v16  ;;  %v1356_v18 = vsel %vm1120_vm0, %v1340_v16, 0.0 }
 0x209   : >> { %v1357_v19 = vadd.f32 %v1356_v18, %v1355_v15 }
 0x20a   : >> { %1353 = vst.msk [vmem:[%s1351_s18] sm:$0xf] %vm1352_vm4, %v2434_v14  ;;  %1354 = vst.msk [vmem:[%s1351_s18 + $0x4] sm:$0xf] %vm1352_vm4, %v2435_v17  ;;  %s3188_s18 = smov (%p1201_p1), [#allocation22]  }
 0x20b   : >> { %v1358_v20 = vrot.slane %v1357_v19, 4  ;;  %s3073_s20 = sshll.u32 (%p1201_p1), %s3188_s18, 4  ;;  %s3074_s20 = int_to_ptr.vmem [resolvable:$false] %s3073_s20 }
 0x20c   : > { %s3075_s24 = scalar_lea.vmem (%p1201_p1), %s3074_s20, 8192  ;;  %p3076_p9 = scmp.lt.s32.totalorder (%p1201_p1), %s4077_s22, %s3074_s20 }
 0x20d   : >> { %v1359_v21 = vadd.f32 %v1358_v20, %v1357_v19 }
 0x20f   : >> { %v1360_v22 = vrot.slane %v1359_v21, 2 }
 0x211   : >> { %v1361_v23 = vadd.f32 %v1360_v22, %v1359_v21  ;;  %v1365_v3 = vld [vmem:[#allocation3] sm:$0xf] (%p1201_p1)  ;;  %v1366_v4 = vld [vmem:[#allocation3 + $0x4] sm:$0xf] (%p1201_p1)  ;;  %v1367_v5 = vld [vmem:[#allocation3 + $0x8] sm:$0xf] (%p1201_p1) }
 0x212   : > { %v1368_v6 = vld [vmem:[#allocation3 + $0xc] sm:$0xf] (%p1201_p1)  ;;  %v1369_v8 = vld [vmem:[#allocation3 + $0x10] sm:$0xf] (%p1201_p1)  ;;  %v1370_v9 = vld [vmem:[#allocation3 + $0x14] sm:$0xf] (%p1201_p1) }
 0x213   : >> { %v1362_v24 = vrot.slane %v1361_v23, 1  ;;  %v1371_v19 = vld [vmem:[#allocation3 + $0x18] sm:$0xf] (%p1201_p1)  ;;  %v1372_v20 = vld [vmem:[#allocation3 + $0x1c] sm:$0xf] (%p1201_p1) }
 0x214   : > { %v1373_v21 = vld [vmem:[#allocation3 + $0x20] sm:$0xf] (%p1201_p1)  ;;  %v1374_v22 = vld [vmem:[#allocation3 + $0x24] sm:$0xf] (%p1201_p1)  ;;  %v1383_v48 = vld [vmem:[#allocation3 + $0x48] sm:$0xf] (%p1201_p1) }
 0x215   : >> { %v1363_v25 = vadd.f32 %v1362_v24, %v1361_v23  ;;  %1203 = sbr.rel (!%p1201_p1) target bundleno = 480 (0x1e0), region = 176  ;;  %v1384_v49 = vld [vmem:[#allocation3 + $0x4c] sm:$0xf] (%p1201_p1)  ;;  %v1389_v59 = vld [vmem:[#allocation3 + $0x60] sm:$0xf] (%p1201_p1) }
 0x217   : >> { %v1364_v26 = vadd.f32 %v3165_v62, %v1363_v25  }
 0x219   : >> { %v4184_v62 = vmov %v1364_v26  ;;  %v1397_v34 = vmul.f32 (%p1201_p1), 0.00390625, %v1364_v26 }
 0x21a   : > { %v1403_v62 = vld [vmem:[%s4185_s14 + $0x28] sm:$0xff] }
 0x21b   : > { %2532 = vmatpush3.msra.mxu0 %v1403_v62  ;;  %v1375_v62 = vld [vmem:[#allocation3 + $0x28] sm:$0xf] }
 0x21c   : > { %2533 = vmatprep.subr.mxu0 %v3186_v0 }
 0x21d   : > { %2534 = vmatpush3.msra.mxu0 %v1402_v29  ;;  %v1376_v29 = vld [vmem:[#allocation3 + $0x2c] sm:$0xf] }
 0x21e   : > { %2535 = vmatprep.subr.mxu0 %v3186_v0 }
 0x21f   : > { %2536 = vmatpush3.msra.mxu0 %v1401_v30  ;;  %v1377_v30 = vld [vmem:[#allocation3 + $0x30] sm:$0xf] }
 0x220   : > { %2537 = vmatprep.subr.mxu0 %v3186_v0 }
 0x221   : > { %2538 = vmatpush3.msra.mxu0 %v1400_v31  ;;  %v1378_v31 = vld [vmem:[#allocation3 + $0x34] sm:$0xf] }
 0x222   : > { %2539 = vmatprep.subr.mxu0 %v3186_v0 }
 0x223   : > { %2540 = vmatpush3.msra.mxu0 %v1399_v32 }
 0x224   : > { %2541 = vmatprep.subr.mxu0 %v3186_v0 }
 0x225   : > { %2542 = vmatpush3.msra.mxu0 %v1398_v33 }
 0x226   : > { %2544 = vmatmul.mubr.msk.f32.vlgmr.msra.gmra.mxu0 %vm1120_vm0, %v1397_v34  ;;  %2546 = vmatprep.subr.mxu0 %v3186_v0 }
 0x227   : > { %2547 = vmatpush3.msra.mxu0 %v1488_v35  ;;  %2562 = vmatprep.mubr.msk.f32.mxu0 %vm3187_vm5, %v3186_v0 }
 0x228   : > { %2548 = vmatprep.subr.mxu0 %v3186_v0 }
 0x229   : > { %2549 = vmatpush3.msra.mxu0 %v1487_v36 }
 0x22a   : > { %2550 = vmatprep.subr.mxu0 %v3186_v0 }
 0x22b   : > { %2551 = vmatpush3.msra.mxu0 %v1486_v37 }
 0x22c   : > { %2552 = vmatprep.subr.mxu0 %v3186_v0 }
 0x22d   : > { %2553 = vmatpush3.msra.mxu0 %v1485_v38  ;;  %v1379_v38 = vld [vmem:[#allocation3 + $0x38] sm:$0xf] }
 0x22e   : > { %2554 = vmatprep.subr.mxu0 %v3186_v0 }
 0x22f   : > { %2555 = vmatpush3.msra.mxu0 %v1484_v39  ;;  %v1380_v39 = vld [vmem:[#allocation3 + $0x3c] sm:$0xf] }
 0x230   : > { %2556 = vmatprep.subr.mxu0 %v3186_v0 }
 0x231   : > { %2557 = vmatpush3.msra.mxu0 %v1483_v40  ;;  %v1381_v40 = vld [vmem:[#allocation3 + $0x40] sm:$0xf] }
 0x232   : > { %2558 = vmatprep.subr.mxu0 %v3186_v0 }
 0x233   : > { %2559 = vmatpush3.msra.mxu0 %v1482_v41  ;;  %v1382_v41 = vld [vmem:[#allocation3 + $0x44] sm:$0xf] }
 0x234   : > { %2560 = vmatprep.subr.mxu0 %v3186_v0  ;;  %v2779_v0 = vld [vmem:[%s4186_s5 + $0x8] sm:$0xff]  }
 0x235   : > { %2561 = vmatpush3.msra.mxu0 %v1481_v42  ;;  %2569 = vmatprep.subr.bf16.mxu1 %v2779_v0 }
 0x236   : > { %2570 = vmatpush3.bf16.msra.mxu1 %v2779_v0  ;;  %v1385_v0 = vld [vmem:[#allocation3 + $0x50] sm:$0xf] }
 0x237   : > { %2571 = vmatprep.subr.bf16.mxu1 %v2780_v51 }
 0x23a   : > { %2572 = vmatpush3.bf16.msra.mxu1 %v2780_v51  ;;  %v1386_v51 = vld [vmem:[#allocation3 + $0x54] sm:$0xf] }
 0x2e6   : > { %v1476_v44 = vpop.f32.mrf.mxu0 }
 0x2e7   : > { %v1477_v45 = vadd.f32 %v1476_v44, %v1406_v43 }
 0x2e8   : > { %v2545_v46 = vpop.f32.mrf.mxu0 }
 0x2e9   : > { %v1480_v47 = vmax.f32 %v1477_v45, 0.0 }
 0x2eb   : > { %2563 = vmatmul.mubr.msk.f32.vlgmr.msra.gmra.mxu0 %vm1120_vm0, %v1480_v47 }
 0x3ab   : > { %v1559_v50 = vpop.f32.mrf.mxu0 }
 0x3ac   : > { %v1560_v54 = vadd.f32 %v1559_v50, %v1489_v53 }
 0x3ad   : > { %v2564_v55 = vpop.f32.mrf.mxu0 }
 0x3ae   : > { %v1563_v56 = vadd.f32 3.0, %v1560_v54 }
 0x3b0   : > { %v1564_v57 = vmax.f32 %v1563_v56, 0.0 }
 0x3b2   : > { %v1565_v58 = vmin.f32 %v1564_v57, 6.0  ;;  %v1387_v57 = vld [vmem:[#allocation3 + $0x58] sm:$0xf] }
 0x3b4   : > { %v1566_v60 = vmul.f32 0.16666667, %v1565_v58  ;;  %v1388_v58 = vld [vmem:[#allocation3 + $0x5c] sm:$0xf] }
 0x3b6   : > { %v1567_v61 = vpack.c.bf16 %v1566_v60, %v1566_v60  ;;  %v1390_v60 = vld [vmem:[#allocation3 + $0x64] sm:$0xf] }
 0x3b8   : > { %v1569_v1 = vpack.i.b16 %v1567_v61, %v1567_v61 }
 0x3ba   : > { %v1574_v2 = vrot.slane %v1569_v1, %v1573_v63 }
 0x3bc   : > { %v3860_v7 = vcombine.low %v1574_v2, %v1574_v2 }
 0x3be   : > { %v1579_v10 = vmul.bf16 %v3860_v7, %v1365_v3  ;;  %v1580_v11 = vmul.bf16 %v3860_v7, %v1366_v4  ;;  %v1581_v12 = vmul.bf16 %v3860_v7, %v1367_v5  ;;  %v1582_v13 = vmul.bf16 %v3860_v7, %v1368_v6  ;;  %v1391_v5 = vld [vmem:[#allocation3 + $0x68] sm:$0xf]  ;;  %v1392_v6 = vld [vmem:[#allocation3 + $0x6c] sm:$0xf] }
 0x3bf   : > { %v1583_v14 = vmul.bf16 %v3860_v7, %v1369_v8  ;;  %v1584_v15 = vmul.bf16 %v3860_v7, %v1370_v9  ;;  %v1585_v23 = vmul.bf16 %v3860_v7, %v1371_v19  ;;  %v1586_v24 = vmul.bf16 %v3860_v7, %v1372_v20  ;;  %v1393_v8 = vld [vmem:[#allocation3 + $0x70] sm:$0xf]  ;;  %v1394_v9 = vld [vmem:[#allocation3 + $0x74] sm:$0xf] }
 0x3c0   : > { %v2390_v16 = vcombine.low %v1579_v10, %v1580_v11  ;;  %v2391_v17 = vcombine.low %v1581_v12, %v1582_v13  ;;  %v1587_v25 = vmul.bf16 %v3860_v7, %v1373_v21  ;;  %v1588_v26 = vmul.bf16 %v3860_v7, %v1374_v22  ;;  %v3910_v21 = vld [vmem:[#allocation19] ss:$0 sm:$0xff] }
 0x3c1   : > { %v2392_v18 = vcombine.low %v1583_v14, %v1584_v15  ;;  %v2393_v27 = vcombine.low %v1585_v23, %v1586_v24  ;;  %v1589_v32 = vmul.bf16 %v3860_v7, %v1375_v62  ;;  %v1590_v33 = vmul.bf16 %v3860_v7, %v1376_v29  ;;  %v3912_v23 = vld [vmem:[#allocation21] ss:$0 sm:$0xff] }
 0x3c2   : > { %2573 = vmatprep.mubr.msk.bf16.mxu1 %vm1120_vm0, %v2390_v16  ;;  %v2394_v28 = vcombine.low %v1587_v25, %v1588_v26  ;;  %v1591_v34 = vmul.bf16 %v3860_v7, %v1377_v30  ;;  %v1592_v35 = vmul.bf16 %v3860_v7, %v1378_v31  ;;  %v1593_v42 = vmul.bf16 %v3860_v7, %v1379_v38  ;;  %v1395_v16 = vld [vmem:[#allocation3 + $0x78] sm:$0xf]  ;;  %v2012_v25 = vld [vmem:[%s3475_s2 + $0x10] sm:$0xff] }
 0x3c3   : > { %2574 = vmatmul.mubr.msk.bf16.vlgmr.msra.gmra.mxu1 %vm1120_vm0, %v2391_v17  ;;  %v2395_v36 = vcombine.low %v1589_v32, %v1590_v33  ;;  %v1594_v43 = vmul.bf16 %v3860_v7, %v1380_v39  ;;  %v1595_v44 = vmul.bf16 %v3860_v7, %v1381_v40  ;;  %v1596_v45 = vmul.bf16 %v3860_v7, %v1382_v41  ;;  %v1396_v17 = vld [vmem:[#allocation3 + $0x7c] sm:$0xf] }
 0x3c4   : > { %2577 = vmatprep.mubr.msk.bf16.mxu1 %vm1120_vm0, %v2392_v18  ;;  %v2396_v37 = vcombine.low %v1591_v34, %v1592_v35  ;;  %v1597_v53 = vmul.bf16 %v3860_v7, %v1383_v48  ;;  %v1598_v50 = vmul.bf16 %v3860_v7, %v1384_v49  ;;  %v1599_v54 = vmul.bf16 %v3860_v7, %v1385_v0  ;;  %v2013_v32 = vld [vmem:[%s3475_s2 + $0x18] sm:$0xff] }
 0x3c5   : > { %v2397_v46 = vcombine.low %v1593_v42, %v1594_v43  ;;  %v2398_v47 = vcombine.low %v1595_v44, %v1596_v45  ;;  %v1600_v55 = vmul.bf16 %v3860_v7, %v1386_v51  ;;  %v1601_v61 = vmul.bf16 %v3860_v7, %v1387_v57  ;;  %v2016_v42 = vld [vmem:[%s3475_s2 + $0x30] sm:$0xff] }
 0x3c6   : > { %v2399_v56 = vcombine.low %v1597_v53, %v1598_v50  ;;  %v1602_v63 = vmul.bf16 %v3860_v7, %v1388_v58  ;;  %v1603_v1 = vmul.bf16 %v3860_v7, %v1389_v59  ;;  %v1604_v2 = vmul.bf16 %v3860_v7, %v1390_v60  ;;  %v2017_v53 = vld [vmem:[%s3475_s2 + $0x38] sm:$0xff] }
 0x3c7   : > { %v2400_v52 = vcombine.low %v1599_v54, %v1600_v55  ;;  %v1605_v10 = vmul.bf16 %v3860_v7, %v1391_v5  ;;  %v1606_v11 = vmul.bf16 %v3860_v7, %v1392_v6  ;;  %v1607_v12 = vmul.bf16 %v3860_v7, %v1393_v8 }
 0x3c8   : > { %v2401_v3 = vcombine.low %v1601_v61, %v1602_v63  ;;  %v2402_v4 = vcombine.low %v1603_v1, %v1604_v2  ;;  %v1608_v13 = vmul.bf16 %v3860_v7, %v1394_v9  ;;  %v1609_v18 = vmul.bf16 %v3860_v7, %v1395_v16  ;;  %v2020_v61 = vld [vmem:[%s3475_s2 + $0x50] sm:$0xff] }
 0x3c9   : > { %v2403_v14 = vcombine.low %v1605_v10, %v1606_v11  ;;  %v1610_v19 = vmul.bf16 %v3860_v7, %v1396_v17  ;;  %v2021_v10 = vld [vmem:[%s3475_s2 + $0x58] sm:$0xff] }
 0x3ca   : > { %v2404_v15 = vcombine.low %v1607_v12, %v1608_v13 }
 0x3cb   : > { %2578 = vmatmul.mubr.msk.bf16.gmra.mxu1 %vm1120_vm0, %v2393_v27  ;;  %v2405_v20 = vcombine.low %v1609_v18, %v1610_v19 }
 0x3cc   : > { %2581 = vmatprep.mubr.msk.bf16.mxu1 %vm1120_vm0, %v2394_v28  ;;  %v2010_v28 = vld [vmem:[%s3475_s2] sm:$0xff] }
 0x3d3   : > { %2582 = vmatmul.mubr.msk.bf16.gmra.mxu1 %vm1120_vm0, %v2395_v36 }
 0x3d4   : > { %2585 = vmatprep.mubr.msk.bf16.mxu1 %vm1120_vm0, %v2396_v37  ;;  %v2011_v37 = vld [vmem:[%s3475_s2 + $0x8] sm:$0xff] }
 0x3db   : > { %2586 = vmatmul.mubr.msk.bf16.gmra.mxu1 %vm1120_vm0, %v2397_v46 }
 0x3dc   : > { %2589 = vmatprep.mubr.msk.bf16.mxu1 %vm1120_vm0, %v2398_v47  ;;  %v2014_v47 = vld [vmem:[%s3475_s2 + $0x20] sm:$0xff] }
 0x3e3   : > { %2590 = vmatmul.mubr.msk.bf16.gmra.mxu1 %vm1120_vm0, %v2399_v56 }
 0x3e4   : > { %2593 = vmatprep.mubr.msk.bf16.mxu1 %vm1120_vm0, %v2400_v52  ;;  %v2015_v52 = vld [vmem:[%s3475_s2 + $0x28] sm:$0xff] }
 0x3eb   : > { %2594 = vmatmul.mubr.msk.bf16.gmra.mxu1 %vm1120_vm0, %v2401_v3 }
 0x3ec   : > { %2597 = vmatprep.mubr.msk.bf16.mxu1 %vm1120_vm0, %v2402_v4  ;;  %v2018_v4 = vld [vmem:[%s3475_s2 + $0x40] sm:$0xff] }
 0x3f3   : > { %2598 = vmatmul.mubr.msk.bf16.gmra.mxu1 %vm1120_vm0, %v2403_v14 }
 0x3f4   : > { %2601 = vmatprep.mubr.msk.bf16.mxu1 %vm1120_vm0, %v2404_v15  ;;  %v2019_v15 = vld [vmem:[%s3475_s2 + $0x48] sm:$0xff] }
 0x3fb   : > { %2602 = vmatmul.mubr.msk.bf16.gmra.mxu1 %vm1120_vm0, %v2405_v20  ;;  %v2024_v20 = vld [vmem:[%s3475_s2 + $0x70] sm:$0xff] }
 0x483   : > { %v2575_v22 = vpop.f32.mrf.mxu1 }
 0x484   : > { %v1941_v24 = vmul.f32 %v2575_v22, %v3910_v21 }
 0x485   : > { %v1805_v26 = vpop.f32.mrf.mxu1 }
 0x486   : > { %v1980_v27 = vadd.f32 %v3912_v23, %v1941_v24  ;;  %v1939_v7 = vmul.f32 %v3910_v21, %v1805_v26 }
 0x487   : > { %v2576_v62 = vpop.f32.mrf.mxu1 }
 0x488   : > { %v2044_v29 = vadd.f32 %v2012_v25, %v1980_v27  ;;  %v1978_v30 = vadd.f32 %v3912_v23, %v1939_v7  ;;  %v1942_v31 = vmul.f32 %v2576_v62, %v3910_v21  ;;  %v2022_v27 = vld [vmem:[%s3475_s2 + $0x60] sm:$0xff] }
 0x489   : > { %v1808_v33 = vpop.f32.mrf.mxu1 }
 0x48a   : > { %2076 = vst.msk [vmem:[%s3733_s1 + $0x10] sm:$0xff] %vm672_vm3, %v2044_v29  ;;  %v2042_v34 = vadd.f32 %v2010_v28, %v1978_v30  ;;  %v1981_v35 = vadd.f32 %v3912_v23, %v1942_v31  ;;  %v1940_v36 = vmul.f32 %v3910_v21, %v1808_v33  ;;  %v2025_v30 = vld [vmem:[%s3475_s2 + $0x78] sm:$0xff] }
 0x48b   : > { %v2579_v38 = vpop.f32.mrf.mxu1 }
 0x48c   : > { %2074 = vst.msk [vmem:[%s3733_s1] sm:$0xff] %vm672_vm3, %v2042_v34  ;;  %v2045_v39 = vadd.f32 %v2013_v32, %v1981_v35  ;;  %v1979_v40 = vadd.f32 %v3912_v23, %v1940_v36  ;;  %v1945_v41 = vmul.f32 %v2579_v38, %v3910_v21  ;;  %v2023_v35 = vld [vmem:[%s3475_s2 + $0x68] sm:$0xff] }
 0x48d   : > { %v1821_v43 = vpop.f32.mrf.mxu1 }
 0x48e   : > { %2077 = vst.msk [vmem:[%s3733_s1 + $0x18] sm:$0xff] %vm672_vm3, %v2045_v39  ;;  %v2043_v44 = vadd.f32 %v2011_v37, %v1979_v40  ;;  %v1984_v45 = vadd.f32 %v3912_v23, %v1945_v41  ;;  %v1943_v46 = vmul.f32 %v3910_v21, %v1821_v43  ;;  %v2028_v40 = vld [vmem:[%s3475_s2 + $0x90] sm:$0xff] }
 0x48f   : > { %v2580_v48 = vpop.f32.mrf.mxu1 }
 0x490   : > { %2075 = vst.msk [vmem:[%s3733_s1 + $0x8] sm:$0xff] %vm672_vm3, %v2043_v44  ;;  %v2048_v49 = vadd.f32 %v2016_v42, %v1984_v45  ;;  %v1982_v0 = vadd.f32 %v3912_v23, %v1943_v46  ;;  %v1946_v51 = vmul.f32 %v2580_v48, %v3910_v21  ;;  %v2026_v45 = vld [vmem:[%s3475_s2 + $0x80] sm:$0xff] }
 0x491   : > { %v1824_v50 = vpop.f32.mrf.mxu1 }
 0x492   : > { %2080 = vst.msk [vmem:[%s3733_s1 + $0x30] sm:$0xff] %vm672_vm3, %v2048_v49  ;;  %v2046_v54 = vadd.f32 %v2014_v47, %v1982_v0  ;;  %v1985_v55 = vadd.f32 %v3912_v23, %v1946_v51  ;;  %v1944_v56 = vmul.f32 %v3910_v21, %v1824_v50  ;;  %v2029_v0 = vld [vmem:[%s3475_s2 + $0x98] sm:$0xff] }
 0x493   : > { %v2583_v57 = vpop.f32.mrf.mxu1 }
 0x494   : > { %2078 = vst.msk [vmem:[%s3733_s1 + $0x20] sm:$0xff] %vm672_vm3, %v2046_v54  ;;  %v2049_v58 = vadd.f32 %v2017_v53, %v1985_v55  ;;  %v1983_v59 = vadd.f32 %v3912_v23, %v1944_v56  ;;  %v1949_v60 = vmul.f32 %v2583_v57, %v3910_v21  ;;  %v2027_v55 = vld [vmem:[%s3475_s2 + $0x88] sm:$0xff] }
 0x495   : > { %v1837_v63 = vpop.f32.mrf.mxu1 }
 0x496   : > { %2081 = vst.msk [vmem:[%s3733_s1 + $0x38] sm:$0xff] %vm672_vm3, %v2049_v58  ;;  %v2047_v1 = vadd.f32 %v2015_v52, %v1983_v59  ;;  %v1988_v2 = vadd.f32 %v3912_v23, %v1949_v60  ;;  %v1947_v3 = vmul.f32 %v3910_v21, %v1837_v63  ;;  %v2032_v59 = vld [vmem:[%s3475_s2 + $0xb0] sm:$0xff] }
 0x497   : > { %v2584_v5 = vpop.f32.mrf.mxu1 }
 0x498   : > { %2079 = vst.msk [vmem:[%s3733_s1 + $0x28] sm:$0xff] %vm672_vm3, %v2047_v1  ;;  %v2052_v6 = vadd.f32 %v2020_v61, %v1988_v2  ;;  %v1986_v8 = vadd.f32 %v3912_v23, %v1947_v3  ;;  %v1950_v9 = vmul.f32 %v2584_v5, %v3910_v21  ;;  %v2030_v2 = vld [vmem:[%s3475_s2 + $0xa0] sm:$0xff] }
 0x499   : > { %v1840_v11 = vpop.f32.mrf.mxu1 }
 0x49a   : > { %2084 = vst.msk [vmem:[%s3733_s1 + $0x50] sm:$0xff] %vm672_vm3, %v2052_v6  ;;  %v2050_v12 = vadd.f32 %v2018_v4, %v1986_v8  ;;  %v1989_v13 = vadd.f32 %v3912_v23, %v1950_v9  ;;  %v1948_v14 = vmul.f32 %v3910_v21, %v1840_v11  ;;  %v2033_v8 = vld [vmem:[%s3475_s2 + $0xb8] sm:$0xff] }
 0x49b   : > { %v2587_v16 = vpop.f32.mrf.mxu1 }
 0x49c   : > { %2082 = vst.msk [vmem:[%s3733_s1 + $0x40] sm:$0xff] %vm672_vm3, %v2050_v12  ;;  %v2053_v17 = vadd.f32 %v2021_v10, %v1989_v13  ;;  %v1987_v18 = vadd.f32 %v3912_v23, %v1948_v14  ;;  %v1953_v19 = vmul.f32 %v2587_v16, %v3910_v21  ;;  %v2031_v13 = vld [vmem:[%s3475_s2 + $0xa8] sm:$0xff] }
 0x49d   : > { %v1853_v22 = vpop.f32.mrf.mxu1 }
 0x49e   : > { %2085 = vst.msk [vmem:[%s3733_s1 + $0x58] sm:$0xff] %vm672_vm3, %v2053_v17  ;;  %v2051_v24 = vadd.f32 %v2019_v15, %v1987_v18  ;;  %v1992_v25 = vadd.f32 %v3912_v23, %v1953_v19  ;;  %v1951_v26 = vmul.f32 %v3910_v21, %v1853_v22  ;;  %v2036_v18 = vld [vmem:[%s3475_s2 + $0xd0] sm:$0xff] }
 0x49f   : > { %v2588_v7 = vpop.f32.mrf.mxu1 }
 0x4a0   : > { %2083 = vst.msk [vmem:[%s3733_s1 + $0x48] sm:$0xff] %vm672_vm3, %v2051_v24  ;;  %v2056_v28 = vadd.f32 %v2024_v20, %v1992_v25  ;;  %v1990_v62 = vadd.f32 %v3912_v23, %v1951_v26  ;;  %v1954_v29 = vmul.f32 %v2588_v7, %v3910_v21  ;;  %v2034_v25 = vld [vmem:[%s3475_s2 + $0xc0] sm:$0xff] }
 0x4a1   : > { %v1856_v31 = vpop.f32.mrf.mxu1 }
 0x4a2   : > { %2088 = vst.msk [vmem:[%s3733_s1 + $0x70] sm:$0xff] %vm672_vm3, %v2056_v28  ;;  %v2054_v32 = vadd.f32 %v2022_v27, %v1990_v62  ;;  %v1993_v33 = vadd.f32 %v3912_v23, %v1954_v29  ;;  %v1952_v34 = vmul.f32 %v3910_v21, %v1856_v31  ;;  %v2037_v62 = vld [vmem:[%s3475_s2 + $0xd8] sm:$0xff] }
 0x4a3   : > { %v2591_v36 = vpop.f32.mrf.mxu1 }
 0x4a4   : > { %2086 = vst.msk [vmem:[%s3733_s1 + $0x60] sm:$0xff] %vm672_vm3, %v2054_v32  ;;  %v2057_v37 = vadd.f32 %v2025_v30, %v1993_v33  ;;  %v1991_v38 = vadd.f32 %v3912_v23, %v1952_v34  ;;  %v1957_v39 = vmul.f32 %v2591_v36, %v3910_v21  ;;  %v2035_v33 = vld [vmem:[%s3475_s2 + $0xc8] sm:$0xff] }
 0x4a5   : > { %v1869_v41 = vpop.f32.mrf.mxu1 }
 0x4a6   : > { %2089 = vst.msk [vmem:[%s3733_s1 + $0x78] sm:$0xff] %vm672_vm3, %v2057_v37  ;;  %v2055_v42 = vadd.f32 %v2023_v35, %v1991_v38  ;;  %v1996_v43 = vadd.f32 %v3912_v23, %v1957_v39  ;;  %v1955_v44 = vmul.f32 %v3910_v21, %v1869_v41  ;;  %v2040_v38 = vld [vmem:[%s3475_s2 + $0xf0] sm:$0xff] }
 0x4a7   : > { %v2592_v46 = vpop.f32.mrf.mxu1 }
 0x4a8   : > { %2087 = vst.msk [vmem:[%s3733_s1 + $0x68] sm:$0xff] %vm672_vm3, %v2055_v42  ;;  %v2060_v47 = vadd.f32 %v2028_v40, %v1996_v43  ;;  %v1994_v48 = vadd.f32 %v3912_v23, %v1955_v44  ;;  %v1958_v49 = vmul.f32 %v2592_v46, %v3910_v21  ;;  %v2038_v43 = vld [vmem:[%s3475_s2 + $0xe0] sm:$0xff] }
 0x4a9   : > { %v1872_v51 = vpop.f32.mrf.mxu1 }
 0x4aa   : > { %2092 = vst.msk [vmem:[%s3733_s1 + $0x90] sm:$0xff] %vm672_vm3, %v2060_v47  ;;  %v2058_v53 = vadd.f32 %v2026_v45, %v1994_v48  ;;  %v1997_v50 = vadd.f32 %v3912_v23, %v1958_v49  ;;  %v1956_v54 = vmul.f32 %v3910_v21, %v1872_v51  ;;  %v2041_v48 = vld [vmem:[%s3475_s2 + $0xf8] sm:$0xff] }
 0x4ab   : > { %v2595_v56 = vpop.f32.mrf.mxu1 }
 0x4ac   : > { %2090 = vst.msk [vmem:[%s3733_s1 + $0x80] sm:$0xff] %vm672_vm3, %v2058_v53  ;;  %v2061_v52 = vadd.f32 %v2029_v0, %v1997_v50  ;;  %v1995_v57 = vadd.f32 %v3912_v23, %v1956_v54  ;;  %v1961_v58 = vmul.f32 %v2595_v56, %v3910_v21  ;;  %v2039_v50 = vld [vmem:[%s3475_s2 + $0xe8] sm:$0xff]  ;;  %s3069_s2 = scalar_lea.vmem %s4077_s22, 4096 }
 0x4ad   : > { %v1885_v60 = vpop.f32.mrf.mxu1  ;;  %p3070_p3 = scmp.ne.s32.totalorder %s4077_s22, %s3069_s2  ;;  %p3077_p11 = scmp.lt.s32.totalorder %s3075_s24, %s3069_s2 }
 0x4ae   : > { %2093 = vst.msk [vmem:[%s3733_s1 + $0x98] sm:$0xff] %vm672_vm3, %v2061_v52  ;;  %v2059_v61 = vadd.f32 %v2027_v55, %v1995_v57  ;;  %v2000_v63 = vadd.f32 %v3912_v23, %v1961_v58  ;;  %v1959_v1 = vmul.f32 %v3910_v21, %v1885_v60 }
 0x4af   : > { %v2596_v3 = vpop.f32.mrf.mxu1  ;;  %p3071_p6 = pnand %p3070_p3, %p4188_p7  ;;  %p3078_p10 = por %p3077_p11, %p3076_p9 }
 0x4b0   : > { %2091 = vst.msk [vmem:[%s3733_s1 + $0x88] sm:$0xff] %vm672_vm3, %v2059_v61  ;;  %v2064_v4 = vadd.f32 %v2032_v59, %v2000_v63  ;;  %v1998_v5 = vadd.f32 %v3912_v23, %v1959_v1  ;;  %v1962_v6 = vmul.f32 %v2596_v3, %v3910_v21 }
 0x4b1   : > { %v1888_v9 = vpop.f32.mrf.mxu1  ;;  %p3072_p8 = pneg %p3071_p6 }
 0x4b2   : > { %2096 = vst.msk [vmem:[%s3733_s1 + $0xb0] sm:$0xff] %vm672_vm3, %v2064_v4  ;;  %v2062_v10 = vadd.f32 %v2030_v2, %v1998_v5  ;;  %v2001_v11 = vadd.f32 %v3912_v23, %v1962_v6  ;;  %v1960_v12 = vmul.f32 %v3910_v21, %v1888_v9 }
 0x4b3   : > { %v2599_v14 = vpop.f32.mrf.mxu1  ;;  %p3079_p12 = pnand %p3078_p10, %p3072_p8 }
 0x4b4   : > { %2094 = vst.msk [vmem:[%s3733_s1 + $0xa0] sm:$0xff] %vm672_vm3, %v2062_v10  ;;  %v2065_v15 = vadd.f32 %v2033_v8, %v2001_v11  ;;  %v1999_v16 = vadd.f32 %v3912_v23, %v1960_v12  ;;  %v1965_v17 = vmul.f32 %v2599_v14, %v3910_v21 }
 0x4b5   : > { %v1901_v19 = vpop.f32.mrf.mxu1 }
 0x4b6   : > { %2097 = vst.msk [vmem:[%s3733_s1 + $0xb8] sm:$0xff] %vm672_vm3, %v2065_v15  ;;  %v2063_v20 = vadd.f32 %v2031_v13, %v1999_v16  ;;  %v2004_v22 = vadd.f32 %v3912_v23, %v1965_v17  ;;  %v1963_v24 = vmul.f32 %v3910_v21, %v1901_v19 }
 0x4b7   : > { %v2600_v26 = vpop.f32.mrf.mxu1 }
 0x4b8   : > { %2095 = vst.msk [vmem:[%s3733_s1 + $0xa8] sm:$0xff] %vm672_vm3, %v2063_v20  ;;  %v2068_v27 = vadd.f32 %v2036_v18, %v2004_v22  ;;  %v2002_v7 = vadd.f32 %v3912_v23, %v1963_v24  ;;  %v1966_v28 = vmul.f32 %v2600_v26, %v3910_v21 }
 0x4b9   : > { %v1904_v29 = vpop.f32.mrf.mxu1 }
 0x4ba   : > { %2100 = vst.msk [vmem:[%s3733_s1 + $0xd0] sm:$0xff] %vm672_vm3, %v2068_v27  ;;  %v2066_v30 = vadd.f32 %v2034_v25, %v2002_v7  ;;  %v2005_v31 = vadd.f32 %v3912_v23, %v1966_v28  ;;  %v1964_v32 = vmul.f32 %v3910_v21, %v1904_v29 }
 0x4bb   : > { %v2603_v34 = vpop.f32.mrf.mxu1 }
 0x4bc   : > { %2098 = vst.msk [vmem:[%s3733_s1 + $0xc0] sm:$0xff] %vm672_vm3, %v2066_v30  ;;  %v2069_v35 = vadd.f32 %v2037_v62, %v2005_v31  ;;  %v2003_v36 = vadd.f32 %v3912_v23, %v1964_v32  ;;  %v1969_v37 = vmul.f32 %v2603_v34, %v3910_v21 }
 0x4bd   : > { %v1917_v39 = vpop.f32.mrf.mxu1 }
 0x4be   : > { %2101 = vst.msk [vmem:[%s3733_s1 + $0xd8] sm:$0xff] %vm672_vm3, %v2069_v35  ;;  %v2067_v40 = vadd.f32 %v2035_v33, %v2003_v36  ;;  %v2008_v41 = vadd.f32 %v3912_v23, %v1969_v37  ;;  %v1967_v42 = vmul.f32 %v3910_v21, %v1917_v39 }
 0x4bf   : > { %v2604_v44 = vpop.f32.mrf.mxu1 }
 0x4c0   : > { %2099 = vst.msk [vmem:[%s3733_s1 + $0xc8] sm:$0xff] %vm672_vm3, %v2067_v40  ;;  %v2072_v45 = vadd.f32 %v2040_v38, %v2008_v41  ;;  %v2006_v46 = vadd.f32 %v3912_v23, %v1967_v42  ;;  %v1970_v47 = vmul.f32 %v2604_v44, %v3910_v21 }
 0x4c1   : > { %v1920_v49 = vpop.f32.mrf.mxu1 }
 0x4c2   : > { %2104 = vst.msk [vmem:[%s3733_s1 + $0xf0] sm:$0xff] %vm672_vm3, %v2072_v45  ;;  %v2070_v0 = vadd.f32 %v2038_v43, %v2006_v46  ;;  %v2009_v51 = vadd.f32 %v3912_v23, %v1970_v47  ;;  %v1968_v53 = vmul.f32 %v3910_v21, %v1920_v49 }
 0x4c4   : > { %2102 = vst.msk [vmem:[%s3733_s1 + $0xe0] sm:$0xff] %vm672_vm3, %v2070_v0  ;;  %v2073_v54 = vadd.f32 %v2041_v48, %v2009_v51  ;;  %v2007_v55 = vadd.f32 %v3912_v23, %v1968_v53 }
 0x4c6   : > { %2105 = vst.msk [vmem:[%s3733_s1 + $0xf8] sm:$0xff] %vm672_vm3, %v2073_v54  ;;  %v2071_v21 = vadd.f32 %v2039_v50, %v2007_v55 }
 0x4c8   : > { %2103 = vst.msk [vmem:[%s3733_s1 + $0xe8] sm:$0xff] %vm672_vm3, %v2071_v21 }
 0x4c9   : > { %3082 = shalt.err (!%p3079_p12)
}
 0x4ca   : > { %s3083_s1 = scalar_lea.hbm %s4075_s6, 4096  ;;  %s3087_s3 = scalar_lea.hbm %s4187_s11, 8192 }
 0x4cb   : > { %p3084_p13 = scmp.ne.s32.totalorder %s4075_s6, %s3083_s1  ;;  %p3088_p2 = scmp.lt.s32.totalorder %s4075_s6, %s4187_s11 }
 0x4cc   : > { %p3089_p5 = scmp.lt.s32.totalorder %s3087_s3, %s3083_s1 }
 0x4cd   : > { %p3085_p0 = pnand %p3084_p13, %p4188_p7 }
 0x4ce   : > { %p3090_p1 = por %p3089_p5, %p3088_p2 }
 0x4cf   : > { %p3086_p4 = pneg %p3085_p0 }
 0x4d1   : > { %p3091_p3 = pnand %p3090_p1, %p3086_p4 }
 0x4d3   : > { %3094 = shalt.err (!%p3091_p3)
}
 0x4d4   : > { %s3189_s2 = smov 128   ;;  %s3190_s20 = smov 8  }
 0x4d5   : > { %2647 = dma.vmem_to_hbm [thread:$0]  (%p4188_p7), %s4077_s22, 4096, %s4075_s6, %s2107_s19, %s3189_s2, %s3189_s2, %s3190_s20  }
 0x4d6 PF: > { %s2135_s24 = sand.u32 1, %s3149_s29   ;;  %p4189_p6 = scmp.ne.s32.totalorder %s4168_s17, 0 }
 0x4d7   : > { %p4190_p8 = scmp.ge.s32.totalorder %s3161_s16, 2  ;;  %s2136_s1 = scalar_lea.sflag [#allocation6], %s2135_s24 }
 0x4d9   : > { %p2685_p9 = pnand %p4190_p8, %p4189_p6 }
 0x4db   : > { %p2686_p11 = pneg %p2685_p9 }
 0x4dd   : > { %3144 = dma.done.wait (%p2686_p11), %s2136_s1, 4096  }
 0x4de   : > { %3146 = vsyncadd (%p2686_p11), %s2136_s1, 4294963200  ;;  %p32_p10 = scmp.ge.s32.totalorder %s3394_s23, 4   ;;  %s4191_s29 = smov %s3153_s30 }
 0x4df   : > { %s4192_s30 = smov %s3157_s15  ;;  %s4193_s15 = smov %s3405_s7 }
 0x4e0   : > { %s4194_s16 = smov %s3394_s23  ;;  %34 = sbr.rel (!%p32_p10) target bundleno = 19 (0x13), region = 187 }
 0x4e5   :  { %2141 = vsyncpa [#allocation5], 1 }
 0x4e6   :  { %2143 = vsyncpa [#allocation5 + $0x1], 1 }
 0x4e7   :  { %2144 = vsyncpa [#allocation8], 1 }
 0x4e8   :  { %2145 = vsyncpa [#allocation11], 1 }
 0x4e9   :  { %2146 = vsyncpa [#allocation14], 1 }
 0x4ea   :  { %2147 = vsyncpa [#allocation17], 1 }
 0x4eb   :  { %2148 = vsyncpa [#allocation20], 1 }
 0x4ec   :  { %2149 = vsyncpa [#allocation6], 1 }
 0x4ed   :  { %2151 = vsyncpa [#allocation6 + $0x1], 1 }

</bundles_post_ra>
